<compile_context>
chip_gen: v6e
topology: v6e:2x2x1
jax: 0.10.0
libtpu: 0.0.40
codegen_flags: <defaults>
</compile_context>

<pallas_src>
import math

import jax
import jax.numpy as jnp
from jax.experimental import pallas as pl
from jax.experimental.pallas import tpu as pltpu

NUM_CLASSES = 55
BN_EPS = 1e-5
NEG_BIG = -1e30  # bias for padded logit lanes; exp() underflows to 0 exactly


def _round_up(v, m):
    return (v + m - 1) // m * m


# --------------------------------------------------------------------------
# Kernel A: conv1/2/3 (+BN, scales pre-folded into W) and running max-pool.
# grid = (point_splits [parallel], point_tiles [arbitrary]); the output block
# (one partial max per split) is resident across the arbitrary axis and acts
# as the accumulator.
# --------------------------------------------------------------------------
def conv_pool_kernel(x_ref, w1_ref, t1_ref, w2_ref, t2_ref, w3_ref, pool_ref):
    n = pl.program_id(1)
    tb, tn, _ = x_ref.shape
    rows = tb * tn

    x = x_ref[...].reshape(rows, 3)                       # f32 [rows, 3]

    # conv1 + bn1 + relu on the VPU in f32 (K=3 is too shallow for the MXU).
    h = (x[:, 0:1] * w1_ref[0:1, :]
         + x[:, 1:2] * w1_ref[1:2, :]
         + x[:, 2:3] * w1_ref[2:3, :]
         + t1_ref[...])
    h1 = jnp.maximum(h, 0.0).astype(jnp.bfloat16)         # [rows, 64]

    # conv2 + bn2 + relu (MXU, bf16 operands, f32 accumulate).
    h = jnp.dot(h1, w2_ref[...], preferred_element_type=jnp.float32) + t2_ref[...]
    h2 = jnp.maximum(h, 0.0).astype(jnp.bfloat16)         # [rows, 128]

    # conv3 + bn3-scale (shift deferred to the head; max commutes with +const).
    h3 = jnp.dot(h2, w3_ref[...], preferred_element_type=jnp.float32)  # [rows, 1024]

    # per-sample max over this point tile
    blk_max = h3.reshape(tb, tn, h3.shape[-1]).max(axis=1)             # [tb, 1024]

    @pl.when(n == 0)
    def _():
        pool_ref[0] = blk_max

    @pl.when(n > 0)
    def _():
        pool_ref[0] = jnp.maximum(pool_ref[0], blk_max)


# --------------------------------------------------------------------------
# Kernel B: combine partial maxes, apply deferred conv3 shift, fc1/fc2/fc3
# (+BN, scales pre-folded) and log_softmax.  Whole-array (no grid) call; the
# pooled features and fc weights are tiny.
# --------------------------------------------------------------------------
def head_kernel(pool_ref, t3_ref, w4_ref, t4_ref, w5_ref, t5_ref,
                w6_ref, t6_ref, out_ref):
    g = pool_ref[...].max(axis=0) + t3_ref[...]           # [B, 1024] f32

    f = jnp.dot(g.astype(jnp.bfloat16), w4_ref[...],
                preferred_element_type=jnp.float32) + t4_ref[...]
    f = jnp.maximum(f, 0.0).astype(jnp.bfloat16)          # fc1+bn4+relu -> [B, 512]

    # dropout(p=0.4) is identity in eval mode
    f = jnp.dot(f, w5_ref[...],
                preferred_element_type=jnp.float32) + t5_ref[...]
    f = jnp.maximum(f, 0.0).astype(jnp.bfloat16)          # fc2+bn5+relu -> [B, 256]

    logits = jnp.dot(f, w6_ref[...],
                     preferred_element_type=jnp.float32) + t6_ref[...]  # [B, cpad]

    m = jnp.max(logits, axis=-1, keepdims=True)
    z = logits - m
    lse = jnp.log(jnp.sum(jnp.exp(z), axis=-1, keepdims=True))
    out_ref[...] = z - lse


def pointnet_classify(points, params, *, point_splits=None, target_rows=512):
    """points: [B, N, 3] f32; params: 6 tuples (W[in,out], scale[1,out], shift[1,out])."""
    B, N, C = points.shape
    assert C == 3
    num_classes = params[-1][0].shape[-1]
    cpad = _round_up(num_classes, 128)

    (w1, s1, t1), (w2, s2, t2), (w3, s3, t3), \
        (w4, s4, t4), (w5, s5, t5), (w6, s6, t6) = params

    # ---- fold BN scales into the weights (host-side, f32), keep shifts ------
    w1f = (w1 * s1).astype(jnp.float32)                    # conv1 stays f32 (VPU)
    w2f = (w2 * s2).astype(jnp.bfloat16)
    w3f = (w3 * s3).astype(jnp.bfloat16)
    w4f = (w4 * s4).astype(jnp.bfloat16)
    w5f = (w5 * s5).astype(jnp.bfloat16)
    w6f = jnp.pad(w6 * s6, ((0, 0), (0, cpad - num_classes))).astype(jnp.bfloat16)
    t6f = jnp.pad(t6, ((0, 0), (0, cpad - num_classes)), constant_values=NEG_BIG)

    # ---- tile sizes ----------------------------------------------------------
    # rows = B*tn per MXU pass, capped at ~target_rows to bound the [rows,1024]
    # f32 conv3 tile; tn is a multiple of 8 so in-kernel reshapes stay within
    # (8,128) tiles.
    tn_cap = max(target_rows // B, 8) // 8 * 8
    tn = max(8, min(_round_up(N, 8), tn_cap))

    if point_splits is None:
        # one parallel split per TensorCore (2 on dual-TC chips, 1 on v5e/v6e);
        # harmless if the attribute is missing.
        point_splits = max(1, getattr(jax.devices()[0], "num_cores", 1) or 1)
    S = max(1, min(int(point_splits), pl.cdiv(N, tn)))
    nn = pl.cdiv(N, S * tn)            # sequential point tiles per split
    Np = S * nn * tn

    # pad the point axis by replicating the last real point (max-pool invariant)
    x = points if Np == N else jnp.pad(
        points, ((0, 0), (0, Np - N), (0, 0)), mode="edge")

    pool = pl.pallas_call(
        conv_pool_kernel,
        out_shape=jax.ShapeDtypeStruct((S, B, w3.shape[1]), jnp.float32),
        grid=(S, nn),
        in_specs=[
            pl.BlockSpec((B, tn, 3), lambda s, n: (0, s * nn + n, 0)),
            pl.BlockSpec(w1f.shape, lambda s, n: (0, 0)),
            pl.BlockSpec(t1.shape, lambda s, n: (0, 0)),
            pl.BlockSpec(w2f.shape, lambda s, n: (0, 0)),
            pl.BlockSpec(t2.shape, lambda s, n: (0, 0)),
            pl.BlockSpec(w3f.shape, lambda s, n: (0, 0)),
        ],
        out_specs=pl.BlockSpec((1, B, w3.shape[1]), lambda s, n: (s, 0, 0)),
        compiler_params=pltpu.CompilerParams(
            dimension_semantics=("parallel", "arbitrary")),
    )(x, w1f, t1, w2f, t2, w3f)

    logp = pl.pallas_call(
        head_kernel,
        out_shape=jax.ShapeDtypeStruct((B, cpad), jnp.float32),
    )(pool, t3, w4f, t4, w5f, t5, w6f, t6f)

    return logp[:, :num_classes]


# --------------------------------------------------------------------------
# Deterministic parameter construction + pure-JAX reference
# --------------------------------------------------------------------------
def init_layer(key, in_c, out_c, with_bn=True):
    """Params for one (conv1d-k1 / linear) [+ BN] layer.

    Returns W [in_c, out_c] (pre-transposed), scale [1, out_c], shift [1, out_c]
    with BN (eval mode, running stats) + layer bias folded so that
        y = (x @ W) * scale + shift
    """
    k = jax.random.split(key, 6)
    w = jax.random.normal(k[0], (in_c, out_c), jnp.float32) / math.sqrt(in_c)
    b = 0.02 * jax.random.normal(k[1], (out_c,), jnp.float32)
    if with_bn:
        gamma = 1.0 + 0.1 * jax.random.normal(k[2], (out_c,), jnp.float32)
        beta = 0.1 * jax.random.normal(k[3], (out_c,), jnp.float32)
        run_mean = 0.05 * jax.random.normal(k[4], (out_c,), jnp.float32)
        run_var = jax.random.uniform(k[5], (out_c,), jnp.float32, 0.5, 1.5)
        s = gamma / jnp.sqrt(run_var + BN_EPS)
        t = (b - run_mean) * s + beta
    else:
        s = jnp.ones((out_c,), jnp.float32)
        t = b
    return w, s.reshape(1, out_c), t.reshape(1, out_c)


def make_params(key, num_classes=NUM_CLASSES):
    keys = jax.random.split(key, 6)
    return [
        init_layer(keys[0], 3, 64, with_bn=True),              # conv1 + bn1
        init_layer(keys[1], 64, 128, with_bn=True),             # conv2 + bn2
        init_layer(keys[2], 128, 1024, with_bn=True),           # conv3 + bn3
        init_layer(keys[3], 1024, 512, with_bn=True),           # fc1 + bn4
        init_layer(keys[4], 512, 256, with_bn=True),            # fc2 + bn5
        init_layer(keys[5], 256, num_classes, with_bn=False),   # fc3
    ]


def reference_forward(points, params):
    """Pure-JAX reference of the same forward pass (same numerical path:
    f32 conv1, BN scale folded into W, bf16 matmul operands, f32 accumulate)."""
    (w1, s1, t1), p2, p3, p4, p5, p6 = params

    def mm(x, p, relu):
        w, s, t = p
        h = jnp.dot(x.astype(jnp.bfloat16), (w * s).astype(jnp.bfloat16),
                    preferred_element_type=jnp.float32) + t
        return jnp.maximum(h, 0.0) if relu else h

    B, N, _ = points.shape
    x = points.reshape(B * N, 3)
    h = jnp.maximum(x @ (w1 * s1) + t1, 0.0)          # conv1 + bn1 + relu (f32)
    h = mm(h, p2, True)                               # conv2 + bn2 + relu
    h = mm(h, p3, False)                              # conv3 + bn3
    g = h.reshape(B, N, -1).max(axis=1)               # global max-pool over points
    f = mm(g, p4, True)                               # fc1 + bn4 + relu
    f = mm(f, p5, True)                               # fc2 (+dropout eval) + bn5 + relu
    logits = mm(f, p6, False)                         # fc3
    return jax.nn.log_softmax(logits, axis=-1)


if __name__ == "__main__":
    key = jax.random.PRNGKey(0)
    k_pts, k_par = jax.random.split(key)

    B, N = 2, 128                          # small point cloud: [batch, num_points, xyz]
    points = jax.random.normal(k_pts, (B, N, 3), jnp.float32)
    params = make_params(k_par)

    out = jax.block_until_ready(pointnet_classify(points, params))
    ref = jax.block_until_ready(reference_forward(points, params))

    assert out.shape == (B, NUM_CLASSES), out.shape
    max_err = float(jnp.max(jnp.abs(out - ref)))
    assert max_err < 5e-2, max_err

    print("KERNEL_OK")
</pallas_src>

<mosaic_0001>
module attributes {stable_mosaic.version = 11 : i64} {
  func.func @conv_pool_kernel(%arg0: i32, %arg1: i32, %arg2: memref<2x128x3xf32, #tpu.memory_space<vmem>>, %arg3: memref<3x64xf32, #tpu.memory_space<vmem>>, %arg4: memref<1x64xf32, #tpu.memory_space<vmem>>, %arg5: memref<64x128xbf16, #tpu.memory_space<vmem>>, %arg6: memref<1x128xf32, #tpu.memory_space<vmem>>, %arg7: memref<128x1024xbf16, #tpu.memory_space<vmem>>, %arg8: memref<1x2x1024xf32, #tpu.memory_space<vmem>>) attributes {dimension_semantics = [#tpu.dimension_semantics<parallel>, #tpu.dimension_semantics<arbitrary>], iteration_bounds = array<i64: 1, 1>, scalar_prefetch = 0 : i64, scratch_operands = 0 : i64, tpu.core_type = #tpu.core_type<tc>, window_params = [{transform_indices = @transform_0, window_bounds = array<i64: 2, 128, 3>}, {pipeline_mode = #tpu.pipeline_mode<synchronous>, transform_indices = @transform_1, window_bounds = array<i64: 3, 64>}, {pipeline_mode = #tpu.pipeline_mode<synchronous>, transform_indices = @transform_2, window_bounds = array<i64: 1, 64>}, {pipeline_mode = #tpu.pipeline_mode<synchronous>, transform_indices = @transform_3, window_bounds = array<i64: 64, 128>}, {pipeline_mode = #tpu.pipeline_mode<synchronous>, transform_indices = @transform_4, window_bounds = array<i64: 1, 128>}, {pipeline_mode = #tpu.pipeline_mode<synchronous>, transform_indices = @transform_5, window_bounds = array<i64: 128, 1024>}, {transform_indices = @transform_6, window_bounds = array<i64: 1, 2, 1024>}]} {
    %c0 = arith.constant 0 : index
    %c0_0 = arith.constant 0 : index
    %c0_1 = arith.constant 0 : index
    %0 = vector.load %arg2[%c0, %c0_0, %c0_1] : memref<2x128x3xf32, #tpu.memory_space<vmem>>, vector<2x128x3xf32>
    %1 = vector.shape_cast %0 : vector<2x128x3xf32> to vector<256x3xf32>
    %2 = vector.extract_strided_slice %1 {offsets = [0, 0], sizes = [256, 1], strides = [1, 1]} : vector<256x3xf32> to vector<256x1xf32>
    %c0_2 = arith.constant 0 : index
    %c0_3 = arith.constant 0 : index
    %3 = vector.load %arg3[%c0_2, %c0_3] : memref<3x64xf32, #tpu.memory_space<vmem>>, vector<1x64xf32>
    %4 = vector.broadcast %2 : vector<256x1xf32> to vector<256x64xf32>
    %5 = vector.broadcast %3 : vector<1x64xf32> to vector<256x64xf32>
    %6 = arith.mulf %4, %5 : vector<256x64xf32>
    %7 = vector.extract_strided_slice %1 {offsets = [0, 1], sizes = [256, 1], strides = [1, 1]} : vector<256x3xf32> to vector<256x1xf32>
    %c1 = arith.constant 1 : index
    %c0_4 = arith.constant 0 : index
    %8 = vector.load %arg3[%c1, %c0_4] : memref<3x64xf32, #tpu.memory_space<vmem>>, vector<1x64xf32>
    %9 = vector.broadcast %7 : vector<256x1xf32> to vector<256x64xf32>
    %10 = vector.broadcast %8 : vector<1x64xf32> to vector<256x64xf32>
    %11 = arith.mulf %9, %10 : vector<256x64xf32>
    %12 = arith.addf %6, %11 : vector<256x64xf32>
    %13 = vector.extract_strided_slice %1 {offsets = [0, 2], sizes = [256, 1], strides = [1, 1]} : vector<256x3xf32> to vector<256x1xf32>
    %c2 = arith.constant 2 : index
    %c0_5 = arith.constant 0 : index
    %14 = vector.load %arg3[%c2, %c0_5] : memref<3x64xf32, #tpu.memory_space<vmem>>, vector<1x64xf32>
    %15 = vector.broadcast %13 : vector<256x1xf32> to vector<256x64xf32>
    %16 = vector.broadcast %14 : vector<1x64xf32> to vector<256x64xf32>
    %17 = arith.mulf %15, %16 : vector<256x64xf32>
    %18 = arith.addf %12, %17 : vector<256x64xf32>
    %c0_6 = arith.constant 0 : index
    %c0_7 = arith.constant 0 : index
    %19 = vector.load %arg4[%c0_6, %c0_7] : memref<1x64xf32, #tpu.memory_space<vmem>>, vector<1x64xf32>
    %20 = vector.broadcast %19 : vector<1x64xf32> to vector<256x64xf32>
    %21 = arith.addf %18, %20 : vector<256x64xf32>
    %cst = arith.constant 0.000000e+00 : f32
    %22 = vector.broadcast %cst : f32 to vector<256x64xf32>
    %23 = arith.maximumf %21, %22 : vector<256x64xf32>
    %24 = arith.truncf %23 : vector<256x64xf32> to vector<256x64xbf16>
    %c0_8 = arith.constant 0 : index
    %c0_9 = arith.constant 0 : index
    %25 = vector.load %arg5[%c0_8, %c0_9] : memref<64x128xbf16, #tpu.memory_space<vmem>>, vector<64x128xbf16>
    %cst_10 = arith.constant dense<0.000000e+00> : vector<256x128xf32>
    %26 = tpu.matmul %24, %25, %cst_10 {dimension_numbers = #tpu.dot_dimension_numbers<[1], [0], [0], [1], [0, 0, 1, 1], [], []>} : vector<256x64xbf16>, vector<64x128xbf16>, vector<256x128xf32> -> vector<256x128xf32>
    %c0_11 = arith.constant 0 : index
    %c0_12 = arith.constant 0 : index
    %27 = vector.load %arg6[%c0_11, %c0_12] : memref<1x128xf32, #tpu.memory_space<vmem>>, vector<1x128xf32>
    %28 = vector.broadcast %27 : vector<1x128xf32> to vector<256x128xf32>
    %29 = arith.addf %26, %28 : vector<256x128xf32>
    %cst_13 = arith.constant 0.000000e+00 : f32
    %30 = vector.broadcast %cst_13 : f32 to vector<256x128xf32>
    %31 = arith.maximumf %29, %30 : vector<256x128xf32>
    %32 = arith.truncf %31 : vector<256x128xf32> to vector<256x128xbf16>
    %c0_14 = arith.constant 0 : index
    %c0_15 = arith.constant 0 : index
    %33 = vector.load %arg7[%c0_14, %c0_15] : memref<128x1024xbf16, #tpu.memory_space<vmem>>, vector<128x1024xbf16>
    %cst_16 = arith.constant dense<0.000000e+00> : vector<256x1024xf32>
    %34 = tpu.matmul %32, %33, %cst_16 {dimension_numbers = #tpu.dot_dimension_numbers<[1], [0], [0], [1], [0, 0, 1, 1], [], []>} : vector<256x128xbf16>, vector<128x1024xbf16>, vector<256x1024xf32> -> vector<256x1024xf32>
    %35 = vector.shape_cast %34 : vector<256x1024xf32> to vector<2x128x1024xf32>
    %cst_17 = arith.constant dense<0xFF800000> : vector<2x1024xf32>
    %36 = vector.multi_reduction <maximumf>, %35, %cst_17 [1] : vector<2x128x1024xf32> to vector<2x1024xf32>
    %c0_i32 = arith.constant 0 : i32
    %37 = arith.cmpi eq, %arg1, %c0_i32 : i32
    %38 = arith.extui %37 : i1 to i32
    %c0_i32_18 = arith.constant 0 : i32
    %39 = arith.cmpi ne, %38, %c0_i32_18 : i32
    scf.if %39 {
      %c0_21 = arith.constant 0 : index
      %c0_22 = arith.constant 0 : index
      %c0_23 = arith.constant 0 : index
      %43 = vector.load %arg8[%c0_21, %c0_22, %c0_23] : memref<1x2x1024xf32, #tpu.memory_space<vmem>>, vector<1x2x1024xf32>
      %44 = vector.shape_cast %43 : vector<1x2x1024xf32> to vector<2x1024xf32>
      %45 = vector.shape_cast %36 : vector<2x1024xf32> to vector<1x2x1024xf32>
      tpu.vector_store %arg8[%c0_21, %c0_22, %c0_23], %45 {strides = array<i32>} : memref<1x2x1024xf32, #tpu.memory_space<vmem>>, vector<1x2x1024xf32>,
    } else {
    }
    %c0_i32_19 = arith.constant 0 : i32
    %40 = arith.cmpi sgt, %arg1, %c0_i32_19 : i32
    %41 = arith.extui %40 : i1 to i32
    %c0_i32_20 = arith.constant 0 : i32
    %42 = arith.cmpi ne, %41, %c0_i32_20 : i32
    scf.if %42 {
      %c0_21 = arith.constant 0 : index
      %c0_22 = arith.constant 0 : index
      %c0_23 = arith.constant 0 : index
      %43 = vector.load %arg8[%c0_21, %c0_22, %c0_23] : memref<1x2x1024xf32, #tpu.memory_space<vmem>>, vector<1x2x1024xf32>
      %44 = vector.shape_cast %43 : vector<1x2x1024xf32> to vector<2x1024xf32>
      %45 = arith.maximumf %44, %36 : vector<2x1024xf32>
      %c0_24 = arith.constant 0 : index
      %c0_25 = arith.constant 0 : index
      %c0_26 = arith.constant 0 : index
      %46 = vector.load %arg8[%c0_24, %c0_25, %c0_26] : memref<1x2x1024xf32, #tpu.memory_space<vmem>>, vector<1x2x1024xf32>
      %47 = vector.shape_cast %46 : vector<1x2x1024xf32> to vector<2x1024xf32>
      %48 = vector.shape_cast %45 : vector<2x1024xf32> to vector<1x2x1024xf32>
      tpu.vector_store %arg8[%c0_24, %c0_25, %c0_26], %48 {strides = array<i32>} : memref<1x2x1024xf32, #tpu.memory_space<vmem>>, vector<1x2x1024xf32>,
    } else {
    }
    return
  }
  func.func @transform_0(%arg0: i32, %arg1: i32) -> (i32, i32, i32) {
    %c1_i32 = arith.constant 1 : i32
    %0 = arith.muli %arg0, %c1_i32 : i32
    %1 = arith.addi %0, %arg1 : i32
    %c0_i32 = arith.constant 0 : i32
    %c0_i32_0 = arith.constant 0 : i32
    %c0_i32_1 = arith.constant 0 : i32
    return %c0_i32, %1, %c0_i32_0 : i32, i32, i32
  }
  func.func @transform_1(%arg0: i32, %arg1: i32) -> (i32, i32) {
    %c0_i32 = arith.constant 0 : i32
    %c0_i32_0 = arith.constant 0 : i32
    %c0_i32_1 = arith.constant 0 : i32
    return %c0_i32, %c0_i32_0 : i32, i32
  }
  func.func @transform_2(%arg0: i32, %arg1: i32) -> (i32, i32) {
    %c0_i32 = arith.constant 0 : i32
    %c0_i32_0 = arith.constant 0 : i32
    %c0_i32_1 = arith.constant 0 : i32
    return %c0_i32, %c0_i32_0 : i32, i32
  }
  func.func @transform_3(%arg0: i32, %arg1: i32) -> (i32, i32) {
    %c0_i32 = arith.constant 0 : i32
    %c0_i32_0 = arith.constant 0 : i32
    %c0_i32_1 = arith.constant 0 : i32
    return %c0_i32, %c0_i32_0 : i32, i32
  }
  func.func @transform_4(%arg0: i32, %arg1: i32) -> (i32, i32) {
    %c0_i32 = arith.constant 0 : i32
    %c0_i32_0 = arith.constant 0 : i32
    %c0_i32_1 = arith.constant 0 : i32
    return %c0_i32, %c0_i32_0 : i32, i32
  }
  func.func @transform_5(%arg0: i32, %arg1: i32) -> (i32, i32) {
    %c0_i32 = arith.constant 0 : i32
    %c0_i32_0 = arith.constant 0 : i32
    %c0_i32_1 = arith.constant 0 : i32
    return %c0_i32, %c0_i32_0 : i32, i32
  }
  func.func @transform_6(%arg0: i32, %arg1: i32) -> (i32, i32, i32) {
    %c0_i32 = arith.constant 0 : i32
    %c0_i32_0 = arith.constant 0 : i32
    %c0_i32_1 = arith.constant 0 : i32
    return %arg0, %c0_i32, %c0_i32_0 : i32, i32, i32
  }
}

</mosaic_0001>

<bundles_post_ra>
// kernel: tpu_custom_call.1
= control target key start
LH: loop header
LB: loop body
LE: loop exit
PB: predicated region body
PF: predicated region fallthrough
CT: control target
= control target key end

     0   :  { %11 = vsyncpa [#allocation3], 0  ;;  %s3827_s0 = inlined_call_operand.vmem [shape: f32[2,128,3], index: 0, kind: input, shape index: {}]   ;;  %s3828_s1 = inlined_call_operand.vmem [shape: f32[3,64], index: 1, kind: input, shape index: {}]   ;;  %s3829_s2 = inlined_call_operand.vmem [shape: f32[1,64], index: 2, kind: input, shape index: {}]   ;;  %s3830_s3 = inlined_call_operand.vmem [shape: bf16[64,128], index: 3, kind: input, shape index: {}]   ;;  %s3831_s4 = inlined_call_operand.vmem [shape: f32[1,128], index: 4, kind: input, shape index: {}]   ;;  %s3832_s5 = inlined_call_operand.hbm [shape: bf16[128,1024], index: 5, kind: input, shape index: {}]   ;;  %s3833_s6 = inlined_call_operand.hbm [shape: f32[1,2,1024], index: 6, kind: output, shape index: {}]  }
   0x1   :  { %12 = vsyncpa [#allocation4], 0  ;;  %s3070_s21 = smov [#allocation2]  }
   0x2   :  { %s36_s22 = sshll.u32 %s3070_s21, 4  ;;  %s37_s22 = int_to_ptr.vmem [resolvable:$true] %s36_s22 }
   0x3   :  { %s3034_s23 = scalar_lea.vmem %s37_s22, 8192  ;;  %p3039_p1 = scmp.lt.s32.totalorder %s37_s22, %s37_s22 }
   0x4   :  { %p3035_p0 = scmp.ne.s32.totalorder %s37_s22, %s3034_s23  ;;  %p3040_p2 = scmp.lt.s32.totalorder %s3034_s23, %s3034_s23 }
   0x6   :  { %p3041_p3 = por %p3040_p2, %p3039_p1 }
   0x8   :  { %p3042_p4 = pnand %p3041_p3, %p3035_p0 }
   0xa   :  { %3045 = shalt.err (!%p3042_p4)
}
   0xb   :  { %s3071_s24 = smov 512   ;;  %s3072_s25 = smov 32  }
   0xc   :  { %42 = dma.hbm_to_vmem [thread:$0]  %s3832_s5, 8192, %s37_s22, [#allocation3], %s3071_s24, %s3071_s24, %s3072_s25  }
   0xd   :  { %3066 = dma.done.wait [#allocation3], 8192  }
   0xe   :  { %3067 = vsyncadd [#allocation3], 4294959104  ;;  %v3073_v0 = vmov 1   ;;  %v63_v1 = vld [vmem:[%s3827_s0 + $0x10] sm:$0xff]  ;;  %v61_v2 = vld [vmem:[%s3827_s0] sm:$0xff]  ;;  %v3074_v4 = vmov 2  }
   0xf   :  { %2976 = vset.pattern.permute.xlu0 %v3073_v0  ;;  %2974 = vset.pattern.permute.xlu1 %v3073_v0  ;;  %v62_v3 = vld [vmem:[%s3827_s0 + $0x8] sm:$0xff]  ;;  %v65_v5 = vld [vmem:[%s3827_s0 + $0x20] sm:$0xff]  ;;  %v64_v6 = vld [vmem:[%s3827_s0 + $0x18] sm:$0xff]  ;;  %v3075_v7 = vmov 0   ;;  %vm810_vm0 = vcmask 523264   ;;  %vm2653_vm1 = vcmask 1041409  }
  0x10   :  { %300 = vperm.xlu0 %2976, %v63_v1   ;;  %292 = vperm.xlu1 %2974, %v61_v2   ;;  %v68_v8 = vld [vmem:[%s3827_s0 + $0x38] sm:$0xff]  ;;  %v3142_v9 = vld [vmem:[%s3827_s0 + $0x48] sm:$0xff]  ;;  %v3022_v11 = vld [vmem:[%s3830_s3 + $0x10] sm:$0xff]   ;;  %vm2655_vm2 = vcmask 1043459   ;;  %vm2657_vm3 = vcmask 1045509   ;;  %vm2659_vm4 = vcmask 1047559  }
  0x11   :  { %v3021_v10 = vld [vmem:[%s3830_s3 + $0x18] sm:$0xff]   ;;  %v3023_v12 = vld [vmem:[%s3830_s3 + $0x8] sm:$0xff]   ;;  %v3024_v14 = vld [vmem:[%s3830_s3] sm:$0xff]  }
  0x12   :  { %2918 = vmatprep.subr.bf16.mxu0 %v3021_v10  ;;  %2958 = vmatprep.subr.bf16.mxu1 %v3021_v10  ;;  %v66_v13 = vld [vmem:[%s3827_s0 + $0x28] sm:$0xff]  ;;  %v71_v15 = vld [vmem:[%s3827_s0 + $0x50] sm:$0xff]  ;;  %v73_v17 = vld [vmem:[%s3827_s0 + $0x60] sm:$0xff] }
  0x13   :  { %2919 = vmatpush3.bf16.msra.mxu0 %v3021_v10  ;;  %2962 = vmatpush3.bf16.msra.mxu1 %v3021_v10  ;;  %v67_v16 = vld [vmem:[%s3827_s0 + $0x30] sm:$0xff]  ;;  %v3178_v18 = vld [vmem:[%s3827_s0 + $0x88] sm:$0xff]  ;;  %v69_v20 = vld [vmem:[%s3827_s0 + $0x40] sm:$0xff] }
  0x14   :  { %2979 = vset.pattern.permute.xlu0 %v3074_v4  ;;  %296 = vperm.xlu1 %2974, %v62_v3   ;;  %v3185_v19 = vld [vmem:[%s3827_s0 + $0x90] sm:$0xff]  ;;  %v74_v21 = vld [vmem:[%s3827_s0 + $0x68] sm:$0xff]  ;;  %v72_v23 = vld [vmem:[%s3827_s0 + $0x58] sm:$0xff] }
  0x15   :  { %493 = vperm.xlu0 %2979, %v62_v3   ;;  %2920 = vmatprep.subr.bf16.mxu0 %v3022_v11  ;;  %v75_v22 = vld [vmem:[%s3827_s0 + $0x70] sm:$0xff]  ;;  %v3210_v24 = vld [vmem:[%s3827_s0 + $0xa8] sm:$0xff]  ;;  %v76_v26 = vld [vmem:[%s3827_s0 + $0x78] sm:$0xff] }
  0x16   :  { %2959 = vmatprep.subr.bf16.mxu1 %v3022_v11  ;;  %v3217_v25 = vld [vmem:[%s3827_s0 + $0xb0] sm:$0xff]  ;;  %v3230_v27 = vld [vmem:[%s3827_s0 + $0xa0] sm:$0xff]  ;;  %v3236_v28 = vld [vmem:[%s3827_s0 + $0xb8] sm:$0xff] }
  0x17   :  { %2921 = vmatpush3.bf16.msra.mxu0 %v3022_v11  ;;  %2963 = vmatpush3.bf16.msra.mxu1 %v3022_v11  ;;  %v3243_v29 = vld [vmem:[%s3827_s0 + $0xc8] sm:$0xff]  ;;  %v3254_v30 = vld [vmem:[%s3827_s0 + $0xd0] sm:$0xff]  ;;  %v3261_v33 = vld [vmem:[%s3827_s0 + $0xe0] sm:$0xff] }
  0x18   :  { %2975 = vset.pattern.permute.xlu1 %v3075_v7  ;;  %2922 = vmatprep.subr.bf16.mxu0 %v3023_v12  ;;  %v77_v38 = vld [vmem:[%s3827_s0 + $0x80] sm:$0xff]  ;;  %v3275_v39 = vld [vmem:[%s3827_s0 + $0xe8] sm:$0xff]  ;;  %v3284_v42 = vld [vmem:[%s3827_s0 + $0xf0] sm:$0xff] }
  0x19   :  { %505 = vperm.xlu0 %2979, %v65_v5   ;;  %111 = vperm.xlu1 %2975, %v64_v6   ;;  %v3292_v45 = vld [vmem:[%s3828_s1 + $0x1] ss:$0 sm:$0xff]  ;;  %v3298_v46 = vld [vmem:[%s3828_s1 + $0x2] ss:$0 sm:$0xff]  ;;  %v3303_v47 = vld [vmem:[%s3828_s1] ss:$0 sm:$0xff] }
  0x1a   :  { %2960 = vmatprep.subr.bf16.mxu1 %v3023_v12  ;;  %v80_v52 = vld [vmem:[%s3827_s0 + $0x98] sm:$0xff] }
  0x1b   :  { %2923 = vmatpush3.bf16.msra.mxu0 %v3023_v12  ;;  %2964 = vmatpush3.bf16.msra.mxu1 %v3023_v12  ;;  %v3322_v63 = vld [vmem:[%s3827_s0 + $0xf8] sm:$0xff] }
  0x1c   :  { %2924 = vmatprep.subr.bf16.mxu0 %v3024_v14  ;;  %2961 = vmatprep.subr.bf16.mxu1 %v3024_v14 }
  0x1d   :  { %517 = vperm.xlu0 %2979, %v68_v8   ;;  %2977 = vset.pattern.permute.xlu1 %v3073_v0 }
  0x1e   :  { %304 = vperm.xlu1 %2977, %v64_v6  }
  0x1f   :  { %2925 = vmatpush3.bf16.msra.mxu0 %v3024_v14  ;;  %2965 = vmatpush3.bf16.msra.mxu1 %v3024_v14 }
  0x21   :  { %525 = vperm.xlu0 %2979, %v3142_v9  }
  0x22   :  { %2978 = vset.pattern.permute.xlu1 %v3074_v4 }
  0x23   :  { %489 = vperm.xlu1 %2978, %v61_v2  }
  0x25   :  { %2990 = vset.pattern.permute.xlu0 %v3075_v7 }
  0x26   :  { %96 = vperm.xlu0 %2990, %v61_v2  }
  0x27   :  { %497 = vperm.xlu1 %2978, %v63_v1  }
  0x2a   :  { %101 = vperm.xlu0 %2990, %v62_v3  }
  0x2b   :  { %501 = vperm.xlu1 %2978, %v64_v6  }
  0x2e   :  { %106 = vperm.xlu0 %2990, %v63_v1   ;;  %v3327_v1 = vld [vmem:[%s3829_s2] ss:$0 sm:$0xff] }
  0x2f   :  { %2980 = vset.pattern.permute.xlu1 %v3075_v7 }
  0x30   :  { %121 = vperm.xlu1 %2980, %v66_v13  }
  0x32   :  { %116 = vperm.xlu0 %2990, %v65_v5  }
  0x34   :  { %2981 = vset.pattern.permute.xlu1 %v3073_v0 }
  0x35   :  { %308 = vperm.xlu1 %2981, %v65_v5  }
  0x36   :  { %141 = vperm.xlu0 %2990, %v3142_v9  }
  0x39   :  { %2982 = vset.pattern.permute.xlu1 %v3075_v7 }
  0x3a   :  { %146 = vperm.xlu0 %2990, %v71_v15   ;;  %126 = vperm.xlu1 %2982, %v67_v16  }
  0x3e   :  { %156 = vperm.xlu0 %2990, %v73_v17   ;;  %131 = vperm.xlu1 %2982, %v68_v8  }
  0x42   :  { %181 = vperm.xlu0 %2990, %v3178_v18   ;;  %2983 = vset.pattern.permute.xlu1 %v3073_v0 }
  0x43   :  { %320 = vperm.xlu1 %2983, %v68_v8  }
  0x46   :  { %186 = vperm.xlu0 %2990, %v3185_v19  }
  0x47   :  { %2984 = vset.pattern.permute.xlu1 %v3074_v4 }
  0x48   :  { %509 = vperm.xlu1 %2984, %v66_v13  }
  0x4a   :  { %2998 = vset.pattern.permute.xlu0 %v3073_v0 }
  0x4b   :  { %312 = vperm.xlu0 %2998, %v66_v13  }
  0x4c   :  { %513 = vperm.xlu1 %2984, %v67_v16  }
  0x4f   :  { %316 = vperm.xlu0 %2998, %v67_v16  }
  0x50   :  { %2985 = vset.pattern.permute.xlu1 %v3075_v7 }
  0x51   :  { %136 = vperm.xlu1 %2985, %v69_v20  }
  0x53   :  { %332 = vperm.xlu0 %2998, %v71_v15  }
  0x55   :  { %2986 = vset.pattern.permute.xlu1 %v3073_v0 }
  0x56   :  { %324 = vperm.xlu1 %2986, %v69_v20  }
  0x57   :  { %344 = vperm.xlu0 %2998, %v74_v21  }
  0x5a   :  { %328 = vperm.xlu1 %2986, %v3142_v9  }
  0x5b   :  { %348 = vperm.xlu0 %2998, %v75_v22  }
  0x5e   :  { %2987 = vset.pattern.permute.xlu1 %v3075_v7 }
  0x5f   :  { %151 = vperm.xlu1 %2987, %v72_v23   ;;  %364 = vperm.xlu0 %2998, %v3185_v19  }
  0x63   :  { %2988 = vset.pattern.permute.xlu1 %v3073_v0  ;;  %376 = vperm.xlu0 %2998, %v3210_v24  }
  0x64   :  { %336 = vperm.xlu1 %2988, %v72_v23  }
  0x67   :  { %380 = vperm.xlu0 %2998, %v3217_v25  }
  0x68   :  { %2989 = vset.pattern.permute.xlu1 %v3074_v4 }
  0x69   :  { %521 = vperm.xlu1 %2989, %v69_v20  }
  0x6b   :  { %3005 = vset.pattern.permute.xlu0 %v3074_v4 }
  0x6c   :  { %537 = vperm.xlu0 %3005, %v73_v17  }
  0x6d   :  { %529 = vperm.xlu1 %2989, %v71_v15  }
  0x70   :  { %549 = vperm.xlu0 %3005, %v76_v26  }
  0x71   :  { %533 = vperm.xlu1 %2989, %v72_v23  }
  0x74   :  { %557 = vperm.xlu0 %3005, %v3178_v18  }
  0x75   :  { %2991 = vset.pattern.permute.xlu1 %v3075_v7 }
  0x76   :  { %161 = vperm.xlu1 %2991, %v74_v21  }
  0x78   :  { %569 = vperm.xlu0 %3005, %v3230_v27  }
  0x7a   :  { %2992 = vset.pattern.permute.xlu1 %v3073_v0 }
  0x7b   :  { %340 = vperm.xlu1 %2992, %v73_v17  }
  0x7c   :  { %581 = vperm.xlu0 %3005, %v3236_v28  }
  0x7f   :  { %2993 = vset.pattern.permute.xlu1 %v3075_v7 }
  0x80   :  { %166 = vperm.xlu1 %2993, %v75_v22   ;;  %589 = vperm.xlu0 %3005, %v3243_v29  }
  0x84   :  { %171 = vperm.xlu1 %2993, %v76_v26   ;;  %3013 = vset.pattern.permute.xlu0 %v3075_v7 }
  0x85   :  { %196 = vperm.xlu0 %3013, %v3230_v27  }
  0x88   :  { %2994 = vset.pattern.permute.xlu1 %v3073_v0 }
  0x89   :  { %352 = vperm.xlu1 %2994, %v76_v26   ;;  %221 = vperm.xlu0 %3013, %v3243_v29  }
  0x8b   :  { %v293_v31 = vpop.permute.xlu1 %292  ;;  %v301_v32 = vpop.permute.xlu0 %300 }
  0x8c   :  { %v423_v49 = vmul.f32 %v3292_v45, %v293_v31  ;;  %v425_v3 = vmul.f32 %v3292_v45, %v301_v32 }
  0x8d   :  { %2995 = vset.pattern.permute.xlu1 %v3074_v4  ;;  %226 = vperm.xlu0 %3013, %v3254_v30  }
  0x8e   :  { %541 = vperm.xlu1 %2995, %v74_v21  }
  0x8f   :  { %v297_v34 = vpop.permute.xlu1 %296 }
  0x90   :  { %v494_v35 = vpop.permute.xlu0 %493  ;;  %v424_v56 = vmul.f32 %v3292_v45, %v297_v34 }
  0x91   :  { %236 = vperm.xlu0 %3013, %v3261_v33   ;;  %v621_v58 = vmul.f32 %v3298_v46, %v494_v35 }
  0x92   :  { %545 = vperm.xlu1 %2995, %v75_v22  }
  0x94   :  { %v112_v36 = vpop.permute.xlu1 %111  ;;  %v3264_v37 = vpop.permute.xlu0 %505 }
  0x95   :  { %3014 = vset.pattern.permute.xlu0 %v3073_v0  ;;  %v261_v59 = vmul.f32 %v3303_v47, %v112_v36 }
  0x96   :  { %2996 = vset.pattern.permute.xlu1 %v3075_v7  ;;  %396 = vperm.xlu0 %3014, %v3254_v30  }
  0x97   :  { %176 = vperm.xlu1 %2996, %v77_v38  }
  0x98   :  { %v3277_v40 = vpop.permute.xlu0 %517 }
  0x99   :  { %v305_v41 = vpop.permute.xlu1 %304 }
  0x9a   :  { %408 = vperm.xlu0 %3014, %v3275_v39   ;;  %v426_v53 = vmul.f32 %v3292_v45, %v305_v41 }
  0x9b   :  { %2997 = vset.pattern.permute.xlu1 %v3073_v0 }
  0x9c   :  { %356 = vperm.xlu1 %2997, %v77_v38   ;;  %v3286_v43 = vpop.permute.xlu0 %525  ;;  %v458_v5 = vadd.f32 %v426_v53, %v261_v59 }
  0x9e   :  { %v490_v44 = vpop.permute.xlu1 %489  ;;  %412 = vperm.xlu0 %3014, %v3284_v42  }
  0x9f   :  { %v620_v54 = vmul.f32 %v3298_v46, %v490_v44 }
  0xa0   :  { %360 = vperm.xlu1 %2997, %v3178_v18  }
  0xa1   :  { %v97_v48 = vpop.permute.xlu0 %96 }
  0xa2   :  { %v258_v50 = vmul.f32 %v3303_v47, %v97_v48  ;;  %v498_v51 = vpop.permute.xlu1 %497  ;;  %3019 = vset.pattern.permute.xlu0 %v3074_v4 }
  0xa3   :  { %601 = vperm.xlu0 %3019, %v3261_v33   ;;  %v622_v14 = vmul.f32 %v3298_v46, %v498_v51 }
  0xa4   :  { %v455_v55 = vadd.f32 %v423_v49, %v258_v50  ;;  %2999 = vset.pattern.permute.xlu1 %v3075_v7 }
  0xa5   :  { %v102_v57 = vpop.permute.xlu0 %101  ;;  %191 = vperm.xlu1 %2999, %v80_v52  }
  0xa6   :  { %v652_v60 = vadd.f32 %v620_v54, %v455_v55  ;;  %v259_v61 = vmul.f32 %v3303_v47, %v102_v57  ;;  %v502_v62 = vpop.permute.xlu1 %501 }
  0xa7   :  { %v623_v2 = vmul.f32 %v3298_v46, %v502_v62  ;;  %613 = vperm.xlu0 %3019, %v3322_v63  }
  0xa8   :  { %v456_v6 = vadd.f32 %v424_v56, %v259_v61  ;;  %v691_v12 = vadd.f32 %v3327_v1, %v652_v60 }
  0xa9   :  { %v107_v8 = vpop.permute.xlu0 %106  ;;  %3000 = vset.pattern.permute.xlu1 %v3073_v0  ;;  %v655_v10 = vadd.f32 %v623_v2, %v458_v5 }
  0xaa   :  { %v653_v9 = vadd.f32 %v621_v58, %v456_v6  ;;  %v260_v11 = vmul.f32 %v3303_v47, %v107_v8  ;;  %368 = vperm.xlu1 %3000, %v80_v52   ;;  %v723_v21 = vmax.f32 %v691_v12, 0.0  ;;  %v627_v58 = vmul.f32 %v3298_v46, %v3277_v40 }
  0xab   :  { %v122_v13 = vpop.permute.xlu1 %121  ;;  %v694_v18 = vadd.f32 %v3327_v1, %v655_v10 }
  0xac   :  { %v457_v15 = vadd.f32 %v425_v3, %v260_v11  ;;  %v692_v16 = vadd.f32 %v3327_v1, %v653_v9 }
  0xad   :  { %v117_v17 = vpop.permute.xlu0 %116  ;;  %v726_v34 = vmax.f32 %v694_v18, 0.0 }
  0xae   :  { %v654_v20 = vadd.f32 %v622_v14, %v457_v15  ;;  %3001 = vset.pattern.permute.xlu1 %v3074_v4  ;;  %v724_v22 = vmax.f32 %v692_v16, 0.0  ;;  %v262_v51 = vmul.f32 %v3303_v47, %v117_v17 }
  0xaf   :  { %553 = vperm.xlu1 %3001, %v77_v38  }
  0xb0   :  { %v693_v23 = vadd.f32 %v3327_v1, %v654_v20  ;;  %v309_v26 = vpop.permute.xlu1 %308  ;;  %v755_v31 = vpack.c.bf16 %v724_v22, %v723_v21 }
  0xb1   :  { %v3340_v32 = vpop.permute.xlu0 %141 }
  0xb2   :  { %v725_v35 = vmax.f32 %v693_v23, 0.0  ;;  %2926 = vmatprep.mubr.msk.bf16.mxu0 %vm810_vm0, %v755_v31 }
  0xb3   :  { %561 = vperm.xlu1 %3001, %v3185_v19   ;;  %v427_v19 = vmul.f32 %v3292_v45, %v309_v26 }
  0xb4   :  { %v756_v36 = vpack.c.bf16 %v726_v34, %v725_v35 }
  0xb5   :  { %v127_v41 = vpop.permute.xlu1 %126  ;;  %v3344_v44 = vpop.permute.xlu0 %146  ;;  %v459_v54 = vadd.f32 %v427_v19, %v262_v51  ;;  %v1125_v51 = vld [vmem:[#allocation2 + $0x1c8] sm:$0xff] }
  0xb6   :  { %2927 = vmatmul.mubr.msk.bf16.vlgmr.msra.gmra.mxu0 %vm810_vm0, %v756_v36  ;;  %v264_v5 = vmul.f32 %v3303_v47, %v127_v41  ;;  %v267_v36 = vmul.f32 %v3303_v47, %v3340_v32  ;;  %v1129_v19 = vld [vmem:[#allocation2 + $0x1e8] sm:$0xff] }
  0xb7   :  { %565 = vperm.xlu1 %3001, %v80_v52   ;;  %v624_v52 = vmul.f32 %v3298_v46, %v3264_v37  ;;  %v2892_v32 = vcombine.low %v1125_v51, %v1129_v19 }
  0xb9   :  { %v132_v38 = vpop.permute.xlu1 %131  ;;  %v3347_v48 = vpop.permute.xlu0 %156  ;;  %v656_v60 = vadd.f32 %v624_v52, %v459_v54  ;;  %v2893_v54 = vcombine.high %v1125_v51, %v1129_v19 }
  0xba   :  { %v265_v57 = vmul.f32 %v3303_v47, %v132_v38  ;;  %v629_v38 = vmul.f32 %v3298_v46, %v3286_v43 }
  0xbb   :  { %3002 = vset.pattern.permute.xlu1 %v3075_v7  ;;  %v695_v40 = vadd.f32 %v3327_v1, %v656_v60  ;;  %1645 = vmatprep.subr.bf16.mxu0 %v2893_v54  ;;  %v1121_v60 = vld [vmem:[#allocation2 + $0x1a8] sm:$0xff] }
  0xbc   :  { %201 = vperm.xlu1 %3002, %v3210_v24   ;;  %1646 = vmatpush1.bf16.msra.mxu0 %v2892_v32 }
  0xbd   :  { %v3351_v49 = vpop.permute.xlu0 %181  ;;  %v727_v15 = vmax.f32 %v695_v40, 0.0  ;;  %v3412_v40 = vld [vmem:[%s3827_s0 + $0xd8] sm:$0xff] }
  0xbe   :  { %v321_v50 = vpop.permute.xlu1 %320 }
  0xbf   :  { %v430_v55 = vmul.f32 %v3292_v45, %v321_v50 }
  0xc0   :  { %3003 = vset.pattern.permute.xlu1 %v3073_v0 }
  0xc1   :  { %372 = vperm.xlu1 %3003, %v3230_v27   ;;  %v3357_v53 = vpop.permute.xlu0 %186  ;;  %v263_v27 = vmul.f32 %v3303_v47, %v122_v13  ;;  %v462_v61 = vadd.f32 %v430_v55, %v265_v57  ;;  %v268_v55 = vmul.f32 %v3303_v47, %v3344_v44 }
  0xc3   :  { %v510_v56 = vpop.permute.xlu1 %509  ;;  %v659_v8 = vadd.f32 %v627_v58, %v462_v61 }
  0xc4   :  { %v625_v2 = vmul.f32 %v3298_v46, %v510_v56 }
  0xc5   :  { %3004 = vset.pattern.permute.xlu1 %v3075_v7  ;;  %v698_v16 = vadd.f32 %v3327_v1, %v659_v8  ;;  %v1109_v8 = vld [vmem:[#allocation2 + $0x148] sm:$0xff] }
  0xc6   :  { %v313_v59 = vpop.permute.xlu0 %312  ;;  %206 = vperm.xlu1 %3004, %v3217_v25  }
  0xc7   :  { %v428_v37 = vmul.f32 %v3292_v45, %v313_v59  ;;  %v514_v62 = vpop.permute.xlu1 %513  ;;  %v730_v23 = vmax.f32 %v698_v16, 0.0 }
  0xc8   :  { %v626_v13 = vmul.f32 %v3298_v46, %v514_v62 }
  0xc9   :  { %v460_v3 = vadd.f32 %v428_v37, %v263_v27  ;;  %v1117_v27 = vld [vmem:[#allocation2 + $0x188] sm:$0xff] }
  0xca   :  { %v317_v6 = vpop.permute.xlu0 %316  ;;  %211 = vperm.xlu1 %3004, %v3236_v28   ;;  %v2885_v62 = vcombine.high %v1117_v27, %v1121_v60 }
  0xcb   :  { %v657_v9 = vadd.f32 %v625_v2, %v460_v3  ;;  %v429_v10 = vmul.f32 %v3292_v45, %v317_v6  ;;  %v2884_v2 = vcombine.low %v1117_v27, %v1121_v60 }
  0xcc   :  { %v137_v11 = vpop.permute.xlu1 %136  ;;  %1647 = vmatprep.subr.bf16.mxu0 %v2885_v62 }
  0xcd   :  { %v696_v12 = vadd.f32 %v3327_v1, %v657_v9  ;;  %v461_v14 = vadd.f32 %v429_v10, %v264_v5  ;;  %v266_v56 = vmul.f32 %v3303_v47, %v137_v11  ;;  %1648 = vmatpush1.bf16.msra.mxu0 %v2884_v2  ;;  %v1113_v9 = vld [vmem:[#allocation2 + $0x168] sm:$0xff] }
  0xce   :  { %3006 = vset.pattern.permute.xlu1 %v3073_v0 }
  0xcf   :  { %v728_v17 = vmax.f32 %v696_v12, 0.0  ;;  %v658_v18 = vadd.f32 %v626_v13, %v461_v14  ;;  %384 = vperm.xlu1 %3006, %v3236_v28   ;;  %v3388_v28 = vld [vmem:[%s3827_s0 + $0xc0] sm:$0xff]  ;;  %v2877_v13 = vcombine.high %v1109_v8, %v1113_v9  ;;  %v2876_v14 = vcombine.low %v1109_v8, %v1113_v9 }
  0xd1   :  { %v697_v20 = vadd.f32 %v3327_v1, %v658_v18  ;;  %v325_v21 = vpop.permute.xlu1 %324  ;;  %v757_v22 = vpack.c.bf16 %v728_v17, %v727_v15  ;;  %1649 = vmatprep.subr.bf16.mxu0 %v2877_v13 }
  0xd2   :  { %v431_v52 = vmul.f32 %v3292_v45, %v325_v21  ;;  %1650 = vmatpush1.bf16.msra.mxu0 %v2876_v14  ;;  %v1101_v21 = vld [vmem:[#allocation2 + $0x108] sm:$0xff] }
  0xd3   :  { %v729_v26 = vmax.f32 %v697_v20, 0.0  ;;  %3007 = vset.pattern.permute.xlu1 %v3074_v4  ;;  %2930 = vmatprep.mubr.msk.bf16.mxu0 %vm810_vm0, %v757_v22  ;;  %v1105_v22 = vld [vmem:[#allocation2 + $0x128] sm:$0xff] }
  0xd4   :  { %573 = vperm.xlu1 %3007, %v3210_v24   ;;  %v333_v24 = vpop.permute.xlu0 %332  ;;  %v463_v61 = vadd.f32 %v431_v52, %v266_v56  ;;  %v1089_v56 = vld [vmem:[#allocation2 + $0xa8] sm:$0xff] }
  0xd5   :  { %v329_v31 = vpop.permute.xlu1 %328  ;;  %v758_v34 = vpack.c.bf16 %v730_v23, %v729_v26  ;;  %v433_v43 = vmul.f32 %v3292_v45, %v333_v24 }
  0xd6   :  { %v432_v41 = vmul.f32 %v3292_v45, %v329_v31 }
  0xd7   :  { %2931 = vmatmul.mubr.msk.bf16.gmra.mxu0 %vm810_vm0, %v758_v34  ;;  %v465_v3 = vadd.f32 %v433_v43, %v268_v55  ;;  %v2869_v34 = vcombine.high %v1101_v21, %v1105_v22  ;;  %v1085_v55 = vld [vmem:[#allocation2 + $0x88] sm:$0xff] }
  0xd8   :  { %577 = vperm.xlu1 %3007, %v3217_v25   ;;  %v464_v25 = vadd.f32 %v432_v41, %v267_v36  ;;  %v3404_v58 = vpop.permute.xlu0 %344  ;;  %v2868_v36 = vcombine.low %v1101_v21, %v1105_v22  ;;  %v2852_v60 = vcombine.low %v1085_v55, %v1089_v56 }
  0xd9   :  { %1651 = vmatprep.subr.bf16.mxu0 %v2869_v34  ;;  %v3457_v34 = vld [vmem:[#allocation2 + $0x1c0] sm:$0xff] }
  0xda   :  { %v152_v35 = vpop.permute.xlu1 %151  ;;  %v661_v57 = vadd.f32 %v629_v38, %v464_v25  ;;  %v1093_v38 = vld [vmem:[#allocation2 + $0xc8] sm:$0xff]  ;;  %1652 = vmatpush1.bf16.msra.mxu0 %v2868_v36  ;;  %v3459_v36 = vld [vmem:[#allocation2 + $0x1e0] sm:$0xff] }
  0xdb   :  { %v269_v16 = vmul.f32 %v3303_v47, %v152_v35  ;;  %v1097_v25 = vld [vmem:[#allocation2 + $0xe8] sm:$0xff] }
  0xdc   :  { %3008 = vset.pattern.permute.xlu1 %v3075_v7  ;;  %v700_v44 = vadd.f32 %v3327_v1, %v661_v57  ;;  %v2861_v19 = vcombine.high %v1093_v38, %v1097_v25  ;;  %v2860_v52 = vcombine.low %v1093_v38, %v1097_v25 }
  0xdd   :  { %216 = vperm.xlu1 %3008, %v3388_v28  }
  0xde   :  { %v732_v15 = vmax.f32 %v700_v44, 0.0  ;;  %1653 = vmatprep.subr.bf16.mxu0 %v2861_v19 }
  0xdf   :  { %v337_v50 = vpop.permute.xlu1 %336  ;;  %1654 = vmatpush1.bf16.msra.mxu0 %v2860_v52 }
  0xe0   :  { %v434_v10 = vmul.f32 %v3292_v45, %v337_v50 }
  0xe1   :  { %3009 = vset.pattern.permute.xlu1 %v3073_v0 }
  0xe2   :  { %388 = vperm.xlu1 %3009, %v3388_v28   ;;  %v466_v23 = vadd.f32 %v434_v10, %v269_v16  ;;  %v436_v16 = vmul.f32 %v3292_v45, %v3404_v58 }
  0xe4   :  { %v522_v59 = vpop.permute.xlu1 %521 }
  0xe5   :  { %v628_v37 = vmul.f32 %v3298_v46, %v522_v59  ;;  %v2853_v59 = vcombine.high %v1085_v55, %v1089_v56 }
  0xe6   :  { %392 = vperm.xlu1 %3009, %v3243_v29   ;;  %v3416_v29 = vpop.permute.xlu0 %348 }
  0xe7   :  { %v660_v5 = vadd.f32 %v628_v37, %v463_v61  ;;  %1655 = vmatprep.subr.bf16.mxu0 %v2853_v59  ;;  %v1077_v61 = vld [vmem:[#allocation2 + $0x48] sm:$0xff] }
  0xe8   :  { %v530_v6 = vpop.permute.xlu1 %529  ;;  %1656 = vmatpush1.bf16.msra.mxu0 %v2852_v60  ;;  %v1081_v37 = vld [vmem:[#allocation2 + $0x68] sm:$0xff] }
  0xe9   :  { %v699_v11 = vadd.f32 %v3327_v1, %v660_v5  ;;  %v630_v12 = vmul.f32 %v3298_v46, %v530_v6  ;;  %v2845_v62 = vcombine.high %v1077_v61, %v1081_v37  ;;  %v1073_v5 = vld [vmem:[#allocation2 + $0x28] sm:$0xff] }
  0xea   :  { %3010 = vset.pattern.permute.xlu1 %v3075_v7  ;;  %v3424_v24 = vpop.permute.xlu0 %364 }
  0xeb   :  { %v731_v17 = vmax.f32 %v699_v11, 0.0  ;;  %v662_v18 = vadd.f32 %v630_v12, %v465_v3  ;;  %231 = vperm.xlu1 %3010, %v3412_v40   ;;  %v2844_v3 = vcombine.low %v1077_v61, %v1081_v37  ;;  %1657 = vmatprep.subr.bf16.mxu0 %v2845_v62 }
  0xec   :  { %v534_v20 = vpop.permute.xlu1 %533 }
  0xed   :  { %v759_v26 = vpack.c.bf16 %v732_v15, %v731_v17  ;;  %v631_v31 = vmul.f32 %v3298_v46, %v534_v20  ;;  %v701_v41 = vadd.f32 %v3327_v1, %v662_v18  ;;  %1658 = vmatpush1.bf16.msra.mxu0 %v2844_v3 }
  0xee   :  { %v3431_v43 = vpop.permute.xlu0 %376 }
  0xef   :  { %v663_v35 = vadd.f32 %v631_v31, %v466_v23  ;;  %3011 = vset.pattern.permute.xlu1 %v3073_v0  ;;  %2934 = vmatprep.mubr.msk.bf16.mxu0 %vm810_vm0, %v759_v26  ;;  %v733_v54 = vmax.f32 %v701_v41, 0.0  ;;  %v437_v23 = vmul.f32 %v3292_v45, %v3416_v29 }
  0xf0   :  { %400 = vperm.xlu1 %3011, %v3412_v40  }
  0xf1   :  { %v702_v50 = vadd.f32 %v3327_v1, %v663_v35  ;;  %v162_v51 = vpop.permute.xlu1 %161 }
  0xf2   :  { %v3436_v2 = vpop.permute.xlu0 %380 }
  0xf3   :  { %v734_v32 = vmax.f32 %v702_v50, 0.0 }
  0xf4   :  { %3012 = vset.pattern.permute.xlu1 %v3074_v4 }
  0xf5   :  { %v760_v57 = vpack.c.bf16 %v734_v32, %v733_v54  ;;  %585 = vperm.xlu1 %3012, %v3388_v28   ;;  %v1069_v28 = vld [vmem:[#allocation2 + $0x8] sm:$0xff] }
  0xf6   :  { %v341_v27 = vpop.permute.xlu1 %340  ;;  %v2837_v6 = vcombine.high %v1069_v28, %v1073_v5  ;;  %v2836_v9 = vcombine.low %v1069_v28, %v1073_v5  ;;  %v538_v11 = vpop.permute.xlu0 %537 }
  0xf7   :  { %2935 = vmatmul.mubr.msk.bf16.gmra.mxu0 %vm810_vm0, %v760_v57  ;;  %v435_v10 = vmul.f32 %v3292_v45, %v341_v27 }
  0xf8   :  { %1659 = vmatprep.subr.bf16.mxu0 %v2837_v6 }
  0xf9   :  { %593 = vperm.xlu1 %3012, %v3254_v30   ;;  %v270_v30 = vmul.f32 %v3303_v47, %v3347_v48  ;;  %1660 = vmatpush1.bf16.msra.mxu0 %v2836_v9  ;;  %v271_v48 = vmul.f32 %v3303_v47, %v162_v51  ;;  %v441_v9 = vmul.f32 %v3292_v45, %v3424_v24 }
  0xfa   :  { %v550_v15 = vpop.permute.xlu0 %549 }
  0xfb   :  { %v167_v44 = vpop.permute.xlu1 %166  ;;  %v467_v12 = vadd.f32 %v435_v10, %v270_v30  ;;  %v635_v21 = vmul.f32 %v3298_v46, %v550_v15  ;;  %v468_v26 = vadd.f32 %v436_v16, %v271_v48 }
  0xfc   :  { %v272_v31 = vmul.f32 %v3303_v47, %v167_v44 }
  0xfd   :  { %597 = vperm.xlu1 %3012, %v3412_v40   ;;  %v632_v40 = vmul.f32 %v3298_v46, %v538_v11 }
  0xfe   :  { %v469_v25 = vadd.f32 %v437_v23, %v272_v31  ;;  %v558_v44 = vpop.permute.xlu0 %557 }
  0xff   :  { %v172_v8 = vpop.permute.xlu1 %171  ;;  %v664_v18 = vadd.f32 %v632_v40, %v467_v12  ;;  %v637_v28 = vmul.f32 %v3298_v46, %v558_v44 }
 0x100   :  { %v273_v17 = vmul.f32 %v3303_v47, %v172_v8 }
 0x101   :  { %3015 = vset.pattern.permute.xlu1 %v3075_v7  ;;  %v703_v41 = vadd.f32 %v3327_v1, %v664_v18 }
 0x102   :  { %241 = vperm.xlu1 %3015, %v3275_v39   ;;  %v570_v48 = vpop.permute.xlu0 %569 }
 0x103   :  { %v735_v19 = vmax.f32 %v703_v41, 0.0  ;;  %v1116_v41 = vld [vmem:[#allocation2 + $0x180] sm:$0xff] }
 0x104   :  { %v353_v13 = vpop.permute.xlu1 %352 }
 0x105   :  { %v438_v14 = vmul.f32 %v3292_v45, %v353_v13 }
 0x106   :  { %3016 = vset.pattern.permute.xlu1 %v3073_v0 }
 0x107   :  { %404 = vperm.xlu1 %3016, %v3261_v33   ;;  %v470_v20 = vadd.f32 %v438_v14, %v273_v17  ;;  %v2891_v33 = vcombine.high %v3457_v34, %v3459_v36 }
 0x109   :  { %v542_v22 = vpop.permute.xlu1 %541  ;;  %v667_v35 = vadd.f32 %v635_v21, %v470_v20  ;;  %1452 = vmatprep.subr.bf16.mxu1 %v2891_v33 }
 0x10a   :  { %v633_v58 = vmul.f32 %v3298_v46, %v542_v22 }
 0x10b   :  { %3017 = vset.pattern.permute.xlu1 %v3075_v7  ;;  %v706_v52 = vadd.f32 %v3327_v1, %v667_v35  ;;  %v1120_v35 = vld [vmem:[#allocation2 + $0x1a0] sm:$0xff] }
 0x10c   :  { %v665_v38 = vadd.f32 %v633_v58, %v468_v26  ;;  %246 = vperm.xlu1 %3017, %v3284_v42   ;;  %v582_v58 = vpop.permute.xlu0 %581 }
 0x10d   :  { %v546_v29 = vpop.permute.xlu1 %545  ;;  %v738_v59 = vmax.f32 %v706_v52, 0.0  ;;  %v1108_v52 = vld [vmem:[#allocation2 + $0x140] sm:$0xff] }
 0x10e   :  { %v704_v50 = vadd.f32 %v3327_v1, %v665_v38  ;;  %v634_v51 = vmul.f32 %v3298_v46, %v546_v29 }
 0x110   :  { %v736_v54 = vmax.f32 %v704_v50, 0.0  ;;  %v666_v32 = vadd.f32 %v634_v51, %v469_v25  ;;  %251 = vperm.xlu1 %3017, %v3322_v63   ;;  %v2890_v25 = vcombine.low %v3457_v34, %v3459_v36  ;;  %v2883_v51 = vcombine.high %v1116_v41, %v1120_v35  ;;  %v1092_v36 = vld [vmem:[#allocation2 + $0xc0] sm:$0xff] }
 0x112   :  { %v761_v55 = vpack.c.bf16 %v736_v54, %v735_v19  ;;  %v705_v56 = vadd.f32 %v3327_v1, %v666_v32  ;;  %v177_v57 = vpop.permute.xlu1 %176  ;;  %v1112_v54 = vld [vmem:[#allocation2 + $0x160] sm:$0xff]  ;;  %v3501_v32 = vpop.permute.xlu0 %589 }
 0x113   :  { %v274_v6 = vmul.f32 %v3303_v47, %v177_v57  ;;  %v1100_v57 = vld [vmem:[#allocation2 + $0x100] sm:$0xff] }
 0x114   :  { %v737_v27 = vmax.f32 %v705_v56, 0.0  ;;  %3018 = vset.pattern.permute.xlu1 %v3073_v0  ;;  %2938 = vmatprep.mubr.msk.bf16.mxu0 %vm810_vm0, %v761_v55  ;;  %v2882_v55 = vcombine.low %v1116_v41, %v1120_v35  ;;  %v2875_v56 = vcombine.high %v1108_v52, %v1112_v54 }
 0x115   :  { %416 = vperm.xlu1 %3018, %v3322_v63   ;;  %v275_v63 = vmul.f32 %v3303_v47, %v3351_v49 }
 0x116   :  { %v762_v60 = vpack.c.bf16 %v738_v59, %v737_v27  ;;  %v1104_v59 = vld [vmem:[#allocation2 + $0x120] sm:$0xff] }
 0x117   :  { %v357_v61 = vpop.permute.xlu1 %356  ;;  %v2867_v34 = vcombine.high %v1100_v57, %v1104_v59 }
 0x118   :  { %2939 = vmatmul.mubr.msk.bf16.gmra.mxu0 %vm810_vm0, %v762_v60  ;;  %v2874_v60 = vcombine.low %v1108_v52, %v1112_v54 }
 0x119   :  { %3020 = vset.pattern.permute.xlu1 %v3074_v4  ;;  %1677 = vmatprep.mubr.bf16.mxu0 %v3075_v7  ;;  %v439_v4 = vmul.f32 %v3292_v45, %v357_v61  ;;  %v197_v61 = vpop.permute.xlu0 %196 }
 0x11a   :  { %605 = vperm.xlu1 %3020, %v3275_v39  }
 0x11b   :  { %v361_v37 = vpop.permute.xlu1 %360  ;;  %v471_v30 = vadd.f32 %v439_v4, %v274_v6  ;;  %v640_v4 = vmul.f32 %v3298_v46, %v570_v48 }
 0x11c   :  { %v440_v0 = vmul.f32 %v3292_v45, %v361_v37  ;;  %v1096_v37 = vld [vmem:[#allocation2 + $0xe0] sm:$0xff] }
 0x11e   :  { %609 = vperm.xlu1 %3020, %v3284_v42   ;;  %v472_v3 = vadd.f32 %v440_v0, %v275_v63  ;;  %v276_v42 = vmul.f32 %v3303_v47, %v3357_v53  ;;  %v278_v0 = vmul.f32 %v3303_v47, %v197_v61  ;;  %v2866_v63 = vcombine.low %v1100_v57, %v1104_v59  ;;  %v222_v59 = vpop.permute.xlu0 %221 }
 0x120   :  { %v192_v62 = vpop.permute.xlu1 %191  ;;  %v669_v8 = vadd.f32 %v637_v28, %v472_v3  ;;  %v473_v40 = vadd.f32 %v441_v9, %v276_v42  ;;  %v2859_v3 = vcombine.high %v1092_v36, %v1096_v37  ;;  %v1084_v28 = vld [vmem:[#allocation2 + $0x80] sm:$0xff] }
 0x121   :  { %v277_v16 = vmul.f32 %v3303_v47, %v192_v62 }
 0x122   :  { %v708_v11 = vadd.f32 %v3327_v1, %v669_v8 }
 0x124   :  { %v740_v24 = vmax.f32 %v708_v11, 0.0  ;;  %v1080_v11 = vld [vmem:[#allocation2 + $0x60] sm:$0xff] }
 0x125   :  { %v369_v5 = vpop.permute.xlu1 %368 }
 0x126   :  { %v442_v13 = vmul.f32 %v3292_v45, %v369_v5  ;;  %v1088_v5 = vld [vmem:[#allocation2 + $0xa0] sm:$0xff] }
 0x127   :  { %v2851_v9 = vcombine.high %v1084_v28, %v1088_v5 }
 0x128   :  { %v474_v20 = vadd.f32 %v442_v13, %v277_v16 }
 0x12a   :  { %v554_v39 = vpop.permute.xlu1 %553 }
 0x12b   :  { %v636_v10 = vmul.f32 %v3298_v46, %v554_v39  ;;  %v2858_v39 = vcombine.low %v1092_v36, %v1096_v37 }
 0x12d   :  { %v668_v49 = vadd.f32 %v636_v10, %v471_v30 }
 0x12e   :  { %v562_v12 = vpop.permute.xlu1 %561 }
 0x12f   :  { %v638_v14 = vmul.f32 %v3298_v46, %v562_v12  ;;  %v707_v15 = vadd.f32 %v3327_v1, %v668_v49  ;;  %v1076_v49 = vld [vmem:[#allocation2 + $0x40] sm:$0xff]  ;;  %v444_v12 = vmul.f32 %v3292_v45, %v3431_v43 }
 0x131   :  { %v670_v53 = vadd.f32 %v638_v14, %v473_v40  ;;  %v739_v17 = vmax.f32 %v707_v15, 0.0  ;;  %v643_v40 = vmul.f32 %v3298_v46, %v582_v58  ;;  %v2850_v15 = vcombine.low %v1084_v28, %v1088_v5 }
 0x132   :  { %v566_v18 = vpop.permute.xlu1 %565 }
 0x133   :  { %v639_v21 = vmul.f32 %v3298_v46, %v566_v18  ;;  %v763_v22 = vpack.c.bf16 %v740_v24, %v739_v17  ;;  %v709_v23 = vadd.f32 %v3327_v1, %v670_v53  ;;  %v2843_v53 = vcombine.high %v1076_v49, %v1080_v11  ;;  %v1068_v18 = vld [vmem:[#allocation2] sm:$0xff] }
 0x135   :  { %v671_v26 = vadd.f32 %v639_v21, %v474_v20  ;;  %2942 = vmatprep.mubr.msk.bf16.mxu1 %vm810_vm0, %v763_v22  ;;  %v741_v38 = vmax.f32 %v709_v23, 0.0  ;;  %v1072_v20 = vld [vmem:[#allocation2 + $0x20] sm:$0xff]  ;;  %v445_v21 = vmul.f32 %v3292_v45, %v3436_v2 }
 0x136   :  { %v2835_v58 = vcombine.high %v1068_v18, %v1072_v20 }
 0x137   :  { %v710_v31 = vadd.f32 %v3327_v1, %v671_v26  ;;  %v202_v33 = vpop.permute.xlu1 %201  ;;  %v2842_v26 = vcombine.low %v1076_v49, %v1080_v11 }
 0x138   :  { %v279_v30 = vmul.f32 %v3303_v47, %v202_v33 }
 0x139   :  { %v742_v29 = vmax.f32 %v710_v31, 0.0 }
 0x13a   :  { %v476_v48 = vadd.f32 %v444_v12, %v279_v30 }
 0x13b   :  { %v764_v50 = vpack.c.bf16 %v742_v29, %v741_v38  ;;  %v2834_v38 = vcombine.low %v1068_v18, %v1072_v20  ;;  %v3543_v18 = vld [vmem:[%s3831_s4] ss:$0 sm:$0xff] }
 0x13c   :  { %v373_v19 = vpop.permute.xlu1 %372 }
 0x13d   :  { %2943 = vmatmul.mubr.msk.bf16.vlgmr.msra.gmra.mxu1 %vm810_vm0, %v764_v50  ;;  %v443_v44 = vmul.f32 %v3292_v45, %v373_v19 }
 0x13e   :  { %1453 = vmatpush1.bf16.msra.mxu1 %v2890_v25 }
 0x13f   :  { %1454 = vmatprep.subr.bf16.mxu1 %v2883_v51  ;;  %v475_v6 = vadd.f32 %v443_v44, %v278_v0  ;;  %v645_v44 = vmul.f32 %v3298_v46, %v3501_v32 }
 0x141   :  { %v207_v27 = vpop.permute.xlu1 %206  ;;  %v672_v13 = vadd.f32 %v640_v4, %v475_v6 }
 0x142   :  { %1455 = vmatpush1.bf16.msra.mxu1 %v2882_v55  ;;  %v280_v17 = vmul.f32 %v3303_v47, %v207_v27 }
 0x143   :  { %1456 = vmatprep.subr.bf16.mxu1 %v2875_v56  ;;  %v711_v43 = vadd.f32 %v3327_v1, %v672_v13 }
 0x144   :  { %v477_v33 = vadd.f32 %v445_v21, %v280_v17 }
 0x145   :  { %v212_v62 = vpop.permute.xlu1 %211  ;;  %v743_v29 = vmax.f32 %v711_v43, 0.0 }
 0x146   :  { %1457 = vmatpush1.bf16.msra.mxu1 %v2874_v60  ;;  %v281_v10 = vmul.f32 %v3303_v47, %v212_v62  ;;  %v227_v60 = vpop.permute.xlu0 %226 }
 0x147   :  { %1458 = vmatprep.subr.bf16.mxu1 %v2867_v34  ;;  %v283_v34 = vmul.f32 %v3303_v47, %v222_v59  ;;  %v284_v4 = vmul.f32 %v3303_v47, %v227_v60  ;;  %v1131_v59 = vld [vmem:[#allocation2 + $0x1f8] sm:$0xff] }
 0x14a   :  { %v385_v8 = vpop.permute.xlu1 %384  ;;  %1459 = vmatpush1.bf16.msra.mxu1 %v2866_v63  ;;  %v3526_v37 = vpop.permute.xlu0 %236 }
 0x14b   :  { %v446_v42 = vmul.f32 %v3292_v45, %v385_v8  ;;  %1460 = vmatprep.subr.bf16.mxu1 %v2859_v3 }
 0x14d   :  { %v478_v14 = vadd.f32 %v446_v42, %v281_v10 }
 0x14e   :  { %1461 = vmatpush1.bf16.msra.mxu1 %v2858_v39  ;;  %v397_v3 = vpop.permute.xlu0 %396 }
 0x14f   :  { %v574_v16 = vpop.permute.xlu1 %573  ;;  %1462 = vmatprep.subr.bf16.mxu1 %v2851_v9  ;;  %v675_v22 = vadd.f32 %v643_v40, %v478_v14  ;;  %v449_v8 = vmul.f32 %v3292_v45, %v397_v3 }
 0x150   :  { %v641_v24 = vmul.f32 %v3298_v46, %v574_v16 }
 0x151   :  { %v714_v25 = vadd.f32 %v3327_v1, %v675_v22  ;;  %v481_v10 = vadd.f32 %v449_v8, %v284_v4  ;;  %v286_v8 = vmul.f32 %v3303_v47, %v3526_v37 }
 0x152   :  { %v673_v23 = vadd.f32 %v641_v24, %v476_v48  ;;  %1463 = vmatpush1.bf16.msra.mxu1 %v2850_v15 }
 0x153   :  { %v578_v31 = vpop.permute.xlu1 %577  ;;  %1464 = vmatprep.subr.bf16.mxu1 %v2843_v53  ;;  %v746_v54 = vmax.f32 %v714_v25, 0.0  ;;  %v409_v25 = vpop.permute.xlu0 %408 }
 0x154   :  { %v712_v41 = vadd.f32 %v3327_v1, %v673_v23  ;;  %v642_v35 = vmul.f32 %v3298_v46, %v578_v31 }
 0x156   :  { %v744_v50 = vmax.f32 %v712_v41, 0.0  ;;  %v674_v2 = vadd.f32 %v642_v35, %v477_v33  ;;  %1465 = vmatpush1.bf16.msra.mxu1 %v2842_v26 }
 0x157   :  { %1466 = vmatprep.subr.bf16.mxu1 %v2835_v58 }
 0x158   :  { %v765_v51 = vpack.c.bf16 %v744_v50, %v743_v29  ;;  %v713_v19 = vadd.f32 %v3327_v1, %v674_v2  ;;  %v217_v52 = vpop.permute.xlu1 %216 }
 0x159   :  { %v282_v28 = vmul.f32 %v3303_v47, %v217_v52  ;;  %v3554_v52 = vld [vmem:[#allocation2 + $0x1d0] sm:$0xff] }
 0x15a   :  { %v745_v55 = vmax.f32 %v713_v19, 0.0  ;;  %2946 = vmatprep.mubr.msk.bf16.mxu1 %vm810_vm0, %v765_v51  ;;  %1467 = vmatpush1.bf16.msra.mxu1 %v2834_v38 }
 0x15c   :  { %v766_v56 = vpack.c.bf16 %v746_v54, %v745_v55  ;;  %v3556_v54 = vld [vmem:[#allocation2 + $0x1f0] sm:$0xff]  ;;  %v1127_v55 = vld [vmem:[#allocation2 + $0x1d8] sm:$0xff] }
 0x15d   :  { %v389_v57 = vpop.permute.xlu1 %388  ;;  %v2897_v60 = vcombine.high %v1127_v55, %v1131_v59 }
 0x15e   :  { %2947 = vmatmul.mubr.msk.bf16.gmra.mxu1 %vm810_vm0, %v766_v56  ;;  %v447_v63 = vmul.f32 %v3292_v45, %v389_v57  ;;  %v2895_v57 = vcombine.high %v3554_v52, %v3556_v54 }
 0x15f   :  { %2031 = vmatprep.subr.bf16.mxu0 %v2897_v60 }
 0x160   :  { %v479_v39 = vadd.f32 %v447_v63, %v282_v28  ;;  %1838 = vmatprep.subr.bf16.mxu1 %v2895_v57  ;;  %v1123_v28 = vld [vmem:[#allocation2 + $0x1b8] sm:$0xff] }
 0x161   :  { %v393_v27 = vpop.permute.xlu1 %392 }
 0x162   :  { %v448_v36 = vmul.f32 %v3292_v45, %v393_v27  ;;  %v2896_v27 = vcombine.low %v1127_v55, %v1131_v59 }
 0x164   :  { %v480_v62 = vadd.f32 %v448_v36, %v283_v34  ;;  %v413_v34 = vpop.permute.xlu0 %412 }
 0x166   :  { %v232_v61 = vpop.permute.xlu1 %231  ;;  %v677_v5 = vadd.f32 %v645_v44, %v480_v62  ;;  %v1119_v44 = vld [vmem:[#allocation2 + $0x198] sm:$0xff] }
 0x167   :  { %v285_v15 = vmul.f32 %v3303_v47, %v232_v61  ;;  %v2888_v4 = vcombine.low %v1119_v44, %v1123_v28 }
 0x168   :  { %v716_v9 = vadd.f32 %v3327_v1, %v677_v5  ;;  %v602_v5 = vpop.permute.xlu0 %601 }
 0x16a   :  { %v748_v13 = vmax.f32 %v716_v9, 0.0 }
 0x16b   :  { %v401_v0 = vpop.permute.xlu1 %400 }
 0x16c   :  { %v450_v12 = vmul.f32 %v3292_v45, %v401_v0 }
 0x16e   :  { %v482_v24 = vadd.f32 %v450_v12, %v285_v15  ;;  %v453_v15 = vmul.f32 %v3292_v45, %v413_v34 }
 0x170   :  { %v586_v6 = vpop.permute.xlu1 %585 }
 0x171   :  { %v644_v42 = vmul.f32 %v3298_v46, %v586_v6  ;;  %v2889_v6 = vcombine.high %v1119_v44, %v1123_v28  ;;  %v1118_v44 = vld [vmem:[#allocation2 + $0x190] sm:$0xff]  ;;  %v2894_v28 = vcombine.low %v3554_v52, %v3556_v54 }
 0x172   :  { %v1102_v52 = vld [vmem:[#allocation2 + $0x110] sm:$0xff] }
 0x173   :  { %v676_v30 = vadd.f32 %v644_v42, %v479_v39  ;;  %v648_v42 = vmul.f32 %v3298_v46, %v602_v5  ;;  %v1106_v54 = vld [vmem:[#allocation2 + $0x130] sm:$0xff] }
 0x174   :  { %v594_v49 = vpop.permute.xlu1 %593 }
 0x175   :  { %v715_v32 = vadd.f32 %v3327_v1, %v676_v30  ;;  %v646_v11 = vmul.f32 %v3298_v46, %v594_v49  ;;  %v452_v49 = vmul.f32 %v3292_v45, %v409_v25 }
 0x176   :  { %v2928_v40 = vpop.f32.mrf.mxu0 }
 0x177   :  { %v747_v14 = vmax.f32 %v715_v32, 0.0  ;;  %v678_v16 = vadd.f32 %v646_v11, %v481_v10  ;;  %v902_v56 = vadd.f32 %v2928_v40, %v3543_v18  ;;  %v614_v10 = vpop.permute.xlu0 %613 }
 0x178   :  { %v893_v53 = vpop.f32.mrf.mxu0  ;;  %v598_v48 = vpop.permute.xlu1 %597 }
 0x179   :  { %v767_v17 = vpack.c.bf16 %v748_v13, %v747_v14  ;;  %v647_v20 = vmul.f32 %v3298_v46, %v598_v48  ;;  %v894_v43 = vadd.f32 %v3543_v18, %v893_v53  ;;  %v717_v22 = vadd.f32 %v3327_v1, %v678_v16 }
 0x17a   :  { %v2929_v21 = vpop.f32.mrf.mxu0  ;;  %v1022_v36 = vmax.f32 %v902_v56, 0.0  ;;  %v651_v13 = vmul.f32 %v3298_v46, %v614_v10 }
 0x17b   :  { %2950 = vmatprep.mubr.msk.bf16.mxu1 %vm810_vm0, %v767_v17  ;;  %v679_v23 = vadd.f32 %v647_v20, %v482_v24  ;;  %v1020_v41 = vmax.f32 %v894_v43, 0.0  ;;  %v749_v38 = vmax.f32 %v717_v22, 0.0  ;;  %v905_v50 = vadd.f32 %v2929_v21, %v3543_v18 }
 0x17c   :  { %v896_v26 = vpop.f32.mrf.mxu0 }
 0x17d   :  { %v897_v31 = vadd.f32 %v3543_v18, %v896_v26  ;;  %v242_v58 = vpop.permute.xlu1 %241  ;;  %v718_v33 = vadd.f32 %v3327_v1, %v679_v23  ;;  %v1023_v61 = vmax.f32 %v905_v50, 0.0  ;;  %v3025_v26 = vld [vmem:[%s3828_s1 + $0x2] ss:$0 sm:$0xff]  ;;  %s3077_s1 = smov [#allocation5]  }
 0x17e   :  { %v287_v32 = vmul.f32 %v3303_v47, %v242_v58  ;;  %s2794_s7 = sshll.u32 %s3077_s1, 4  ;;  %s2795_s7 = int_to_ptr.vmem [resolvable:$true] %s2794_s7 }
 0x17f   :  { %v1021_v35 = vmax.f32 %v897_v31, 0.0  ;;  %v750_v29 = vmax.f32 %v718_v33, 0.0  ;;  %v3564_v0 = vpack.c.bf16 %v1023_v61, %v1022_v36  ;;  %s3046_s8 = scalar_lea.vmem %s2795_s7, 256  ;;  %p3051_p6 = scmp.lt.s32.totalorder %s2795_s7, %s2795_s7 }
 0x180   :  { %v484_v14 = vadd.f32 %v452_v49, %v287_v32  ;;  %v2871_v32 = vcombine.high %v1102_v52, %v1106_v54  ;;  %p3047_p5 = scmp.ne.s32.totalorder %s2795_s7, %s3046_s8  ;;  %p3052_p7 = scmp.lt.s32.totalorder %s3046_s8, %s3046_s8 }
 0x181   :  { %v3552_v2 = vpack.c.bf16 %v1021_v35, %v1020_v41  ;;  %v768_v51 = vpack.c.bf16 %v750_v29, %v749_v38 }
 0x182   :  { %v405_v19 = vpop.permute.xlu1 %404  ;;  %p3053_p8 = por %p3052_p7, %p3051_p6 }
 0x183   :  { %1678 = vmatmul.mubr.bf16.vlgmr.msra.gmra.mxu0 %v3552_v2  ;;  %2951 = vmatmul.mubr.msk.bf16.gmra.mxu1 %vm810_vm0, %v768_v51  ;;  %v451_v63 = vmul.f32 %v3292_v45, %v405_v19 }
 0x184   :  { %1687 = vmatprep.mubr.bf16.mxu0 %v3075_v7  ;;  %2032 = vmatpush1.bf16.msra.mxu0 %v2896_v27  ;;  %v1111_v27 = vld [vmem:[#allocation2 + $0x158] sm:$0xff]  ;;  %p3054_p9 = pnand %p3053_p8, %p3047_p5 }
 0x185   :  { %2033 = vmatprep.subr.bf16.mxu0 %v2889_v6  ;;  %v483_v39 = vadd.f32 %v451_v63, %v286_v8  ;;  %v1122_v63 = vld [vmem:[#allocation2 + $0x1b0] sm:$0xff] }
 0x186   :  { %v2887_v5 = vcombine.high %v1118_v44, %v1122_v63  ;;  %v1110_v6 = vld [vmem:[#allocation2 + $0x150] sm:$0xff] }
 0x187   :  { %v247_v62 = vpop.permute.xlu1 %246  ;;  %v680_v12 = vadd.f32 %v648_v42, %v483_v39  ;;  %v1114_v8 = vld [vmem:[#allocation2 + $0x170] sm:$0xff]  ;;  %v1107_v39 = vld [vmem:[#allocation2 + $0x138] sm:$0xff] }
 0x188   :  { %2034 = vmatpush1.bf16.msra.mxu0 %v2888_v4  ;;  %v288_v16 = vmul.f32 %v3303_v47, %v247_v62  ;;  %v1103_v4 = vld [vmem:[#allocation2 + $0x118] sm:$0xff]  ;;  %v2879_v10 = vcombine.high %v1110_v6, %v1114_v8  ;;  %v2878_v49 = vcombine.low %v1110_v6, %v1114_v8 }
 0x189   :  { %v719_v48 = vadd.f32 %v3327_v1, %v680_v12  ;;  %v2872_v42 = vcombine.low %v1103_v4, %v1107_v39  ;;  %v1094_v12 = vld [vmem:[#allocation2 + $0xd0] sm:$0xff] }
 0x18a   :  { %v485_v22 = vadd.f32 %v453_v15, %v288_v16  ;;  %v2870_v15 = vcombine.low %v1102_v52, %v1106_v54  ;;  %v1074_v52 = vld [vmem:[#allocation2 + $0x30] sm:$0xff]  ;;  %v1071_v54 = vld [vmem:[#allocation2 + $0x18] sm:$0xff] }
 0x18b   :  { %1688 = vmatmul.mubr.bf16.gmra.mxu0 %v3564_v0  ;;  %v252_v3 = vpop.permute.xlu1 %251 }
 0x18c   :  { %1697 = vmatprep.mubr.bf16.mxu0 %v3075_v7  ;;  %v289_v11 = vmul.f32 %v3303_v47, %v252_v3 }
 0x190   :  { %v417_v9 = vpop.permute.xlu1 %416 }
 0x191   :  { %v454_v30 = vmul.f32 %v3292_v45, %v417_v9  ;;  %v751_v45 = vmax.f32 %v719_v48, 0.0  ;;  %v2873_v9 = vcombine.high %v1103_v4, %v1107_v39 }
 0x193   :  { %v486_v40 = vadd.f32 %v454_v30, %v289_v11  ;;  %v2886_v30 = vcombine.low %v1118_v44, %v1122_v63  ;;  %v1095_v11 = vld [vmem:[#allocation2 + $0xd8] sm:$0xff] }
 0x195   :  { %v606_v37 = vpop.permute.xlu1 %605  ;;  %v683_v24 = vadd.f32 %v651_v13, %v486_v40  ;;  %v1098_v40 = vld [vmem:[#allocation2 + $0xf0] sm:$0xff]  ;;  %v1099_v13 = vld [vmem:[#allocation2 + $0xf8] sm:$0xff] }
 0x196   :  { %v649_v53 = vmul.f32 %v3298_v46, %v606_v37  ;;  %v2864_v37 = vcombine.low %v1095_v11, %v1099_v13 }
 0x197   :  { %v2932_v17 = vpop.f32.mrf.mxu0  ;;  %v722_v47 = vadd.f32 %v3327_v1, %v683_v24 }
 0x198   :  { %v681_v20 = vadd.f32 %v649_v53, %v484_v14  ;;  %v918_v60 = vadd.f32 %v2932_v17, %v3543_v18  ;;  %v2865_v14 = vcombine.high %v1095_v11, %v1099_v13  ;;  %v2863_v53 = vcombine.high %v1094_v12, %v1098_v40  ;;  %v1075_v11 = vld [vmem:[#allocation2 + $0x38] sm:$0xff] }
 0x199   :  { %v909_v21 = vpop.f32.mrf.mxu0  ;;  %v610_v43 = vpop.permute.xlu1 %609  ;;  %v754_v50 = vmax.f32 %v722_v47, 0.0  ;;  %v2862_v17 = vcombine.low %v1094_v12, %v1098_v40  ;;  %v2840_v12 = vcombine.low %v1071_v54, %v1075_v11  ;;  %v2841_v40 = vcombine.high %v1071_v54, %v1075_v11 }
 0x19a   :  { %v720_v23 = vadd.f32 %v3327_v1, %v681_v20  ;;  %v650_v31 = vmul.f32 %v3025_v26, %v610_v43  ;;  %v910_v33 = vadd.f32 %v3543_v18, %v909_v21  ;;  %v1026_v62 = vmax.f32 %v918_v60, 0.0 }
 0x19b   :  { %v2933_v58 = vpop.f32.mrf.mxu0 }
 0x19c   :  { %v752_v46 = vmax.f32 %v720_v23, 0.0  ;;  %v682_v41 = vadd.f32 %v650_v31, %v485_v22  ;;  %v1024_v51 = vmax.f32 %v910_v33, 0.0  ;;  %v921_v57 = vadd.f32 %v2933_v58, %v3543_v18  ;;  %v1086_v33 = vld [vmem:[#allocation2 + $0x90] sm:$0xff] }
 0x19d   :  { %v912_v35 = vpop.f32.mrf.mxu0 }
 0x19e   :  { %v769_v38 = vpack.c.bf16 %v752_v46, %v751_v45  ;;  %v721_v29 = vadd.f32 %v3327_v1, %v682_v41  ;;  %v913_v25 = vadd.f32 %v3543_v18, %v912_v35  ;;  %v1115_v1 = vld [vmem:[#allocation2 + $0x178] sm:$0xff]  ;;  %v1027_v36 = vmax.f32 %v921_v57, 0.0  ;;  %v1090_v41 = vld [vmem:[#allocation2 + $0xb0] sm:$0xff] }
 0x19f   :  { %v2880_v61 = vcombine.low %v1111_v27, %v1115_v1  ;;  %v2881_v34 = vcombine.high %v1111_v27, %v1115_v1  ;;  %v1087_v35 = vld [vmem:[#allocation2 + $0x98] sm:$0xff] }
 0x1a0   :  { %v753_v19 = vmax.f32 %v721_v29, 0.0  ;;  %v1025_v55 = vmax.f32 %v913_v25, 0.0  ;;  %2954 = vmatprep.mubr.msk.bf16.mxu1 %vm810_vm0, %v769_v38  ;;  %v3598_v3 = vpack.c.bf16 %v1027_v36, %v1026_v62  ;;  %v2854_v38 = vcombine.low %v1086_v33, %v1090_v41  ;;  %v1091_v25 = vld [vmem:[#allocation2 + $0xb8] sm:$0xff] }
 0x1a1   :  { %2035 = vmatprep.subr.bf16.mxu0 %v2881_v34  ;;  %v2855_v29 = vcombine.high %v1086_v33, %v1090_v41  ;;  %v1079_v57 = vld [vmem:[#allocation2 + $0x58] sm:$0xff] }
 0x1a2   :  { %v770_v56 = vpack.c.bf16 %v754_v50, %v753_v19  ;;  %v3591_v59 = vpack.c.bf16 %v1025_v55, %v1024_v51  ;;  %2036 = vmatpush1.bf16.msra.mxu0 %v2880_v61  ;;  %v2856_v50 = vcombine.low %v1087_v35, %v1091_v25  ;;  %v2857_v51 = vcombine.high %v1087_v35, %v1091_v25  ;;  %v1078_v55 = vld [vmem:[#allocation2 + $0x50] sm:$0xff]  ;;  %v1083_v61 = vld [vmem:[#allocation2 + $0x78] sm:$0xff] }
 0x1a3   :  { %2037 = vmatprep.subr.bf16.mxu0 %v2873_v9  ;;  %v2848_v34 = vcombine.low %v1079_v57, %v1083_v61  ;;  %v2849_v36 = vcombine.high %v1079_v57, %v1083_v61 }
 0x1a4   :  { %2955 = vmatmul.mubr.msk.bf16.gmra.mxu1 %vm810_vm0, %v770_v56  ;;  %1698 = vmatmul.mubr.bf16.gmra.mxu0 %v3591_v59  ;;  %v1082_v56 = vld [vmem:[#allocation2 + $0x70] sm:$0xff] }
 0x1a5   :  { %1484 = vmatprep.mubr.bf16.mxu1 %v3075_v7  ;;  %1707 = vmatprep.mubr.bf16.mxu0 %v3075_v7  ;;  %v2846_v60 = vcombine.low %v1078_v55, %v1082_v56  ;;  %v2847_v1 = vcombine.high %v1078_v55, %v1082_v56 }
 0x1a6   :  { %2038 = vmatpush1.bf16.msra.mxu0 %v2872_v42 }
 0x1a7   :  { %2039 = vmatprep.subr.bf16.mxu0 %v2865_v14 }
 0x1aa   :  { %2040 = vmatpush1.bf16.msra.mxu0 %v2864_v37 }
 0x1ab   :  { %2041 = vmatprep.subr.bf16.mxu0 %v2857_v51 }
 0x1ac   :  { %1485 = vmatmul.mubr.bf16.vlgmr.msra.gmra.mxu1 %v3552_v2  ;;  %1708 = vmatmul.mubr.bf16.gmra.mxu0 %v3598_v3 }
 0x1ad   :  { %1494 = vmatprep.mubr.bf16.mxu1 %v3075_v7  ;;  %1717 = vmatprep.mubr.bf16.mxu0 %v3075_v7 }
 0x1ae   :  { %1839 = vmatpush1.bf16.msra.mxu1 %v2894_v28  ;;  %2042 = vmatpush1.bf16.msra.mxu0 %v2856_v50 }
 0x1af   :  { %1840 = vmatprep.subr.bf16.mxu1 %v2887_v5  ;;  %2043 = vmatprep.subr.bf16.mxu0 %v2849_v36 }
 0x1b2   :  { %1841 = vmatpush1.bf16.msra.mxu1 %v2886_v30  ;;  %2044 = vmatpush1.bf16.msra.mxu0 %v2848_v34 }
 0x1b3   :  { %1842 = vmatprep.subr.bf16.mxu1 %v2879_v10  ;;  %v1070_v10 = vld [vmem:[#allocation2 + $0x10] sm:$0xff]  ;;  %2045 = vmatprep.subr.bf16.mxu0 %v2841_v40 }
 0x1b4   :  { %1495 = vmatmul.mubr.bf16.gmra.mxu1 %v3564_v0 }
 0x1b5   :  { %1504 = vmatprep.mubr.bf16.mxu1 %v3075_v7 }
 0x1b6   :  { %1843 = vmatpush1.bf16.msra.mxu1 %v2878_v49  ;;  %v2838_v49 = vcombine.low %v1070_v10, %v1074_v52  ;;  %2046 = vmatpush1.bf16.msra.mxu0 %v2840_v12 }
 0x1b7   :  { %v2936_v16 = vpop.f32.mrf.mxu0  ;;  %1844 = vmatprep.subr.bf16.mxu1 %v2871_v32  ;;  %v2839_v32 = vcombine.high %v1070_v10, %v1074_v52 }
 0x1b8   :  { %v934_v45 = vadd.f32 %v2936_v16, %v3543_v18 }
 0x1b9   :  { %v925_v48 = vpop.f32.mrf.mxu0 }
 0x1ba   :  { %1845 = vmatpush1.bf16.msra.mxu1 %v2870_v15  ;;  %v926_v20 = vadd.f32 %v3543_v18, %v925_v48  ;;  %v1030_v47 = vmax.f32 %v934_v45, 0.0 }
 0x1bb   :  { %v2937_v24 = vpop.f32.mrf.mxu0  ;;  %1846 = vmatprep.subr.bf16.mxu1 %v2863_v53 }
 0x1bc   :  { %1505 = vmatmul.mubr.bf16.gmra.mxu1 %v3591_v59  ;;  %v1028_v22 = vmax.f32 %v926_v20, 0.0  ;;  %v937_v26 = vadd.f32 %v2937_v24, %v3543_v18 }
 0x1bd   :  { %v928_v21 = vpop.f32.mrf.mxu0  ;;  %1514 = vmatprep.mubr.bf16.mxu1 %v3075_v7 }
 0x1be   :  { %v929_v43 = vadd.f32 %v3543_v18, %v928_v21  ;;  %1847 = vmatpush1.bf16.msra.mxu1 %v2862_v17  ;;  %v1031_v58 = vmax.f32 %v937_v26, 0.0 }
 0x1bf   :  { %1848 = vmatprep.subr.bf16.mxu1 %v2855_v29 }
 0x1c0   :  { %v1029_v23 = vmax.f32 %v929_v43, 0.0  ;;  %v3620_v46 = vpack.c.bf16 %v1031_v58, %v1030_v47 }
 0x1c2   :  { %v3613_v31 = vpack.c.bf16 %v1029_v23, %v1028_v22  ;;  %1849 = vmatpush1.bf16.msra.mxu1 %v2854_v38 }
 0x1c3   :  { %1850 = vmatprep.subr.bf16.mxu1 %v2847_v1 }
 0x1c4   :  { %1515 = vmatmul.mubr.bf16.gmra.mxu1 %v3598_v3  ;;  %1718 = vmatmul.mubr.bf16.gmra.mxu0 %v3613_v31 }
 0x1c5   :  { %1524 = vmatprep.mubr.bf16.mxu1 %v3075_v7  ;;  %1727 = vmatprep.mubr.bf16.mxu0 %v3075_v7 }
 0x1c6   :  { %1851 = vmatpush1.bf16.msra.mxu1 %v2846_v60 }
 0x1c7   :  { %1852 = vmatprep.subr.bf16.mxu1 %v2839_v32 }
 0x1ca   :  { %1853 = vmatpush1.bf16.msra.mxu1 %v2838_v49 }
 0x1cc   :  { %1525 = vmatmul.mubr.bf16.gmra.mxu1 %v3613_v31  ;;  %1728 = vmatmul.mubr.bf16.gmra.mxu0 %v3620_v46 }
 0x1cd   :  { %1534 = vmatprep.mubr.bf16.mxu1 %v3075_v7  ;;  %1737 = vmatprep.mubr.bf16.mxu0 %v3075_v7 }
 0x1d4   :  { %1535 = vmatmul.mubr.bf16.gmra.mxu1 %v3620_v46 }
 0x1d5   :  { %1544 = vmatprep.mubr.bf16.mxu1 %v3075_v7 }
 0x1d8   :  { %v2940_v19 = vpop.f32.mrf.mxu0 }
 0x1d9   :  { %v950_v39 = vadd.f32 %v2940_v19, %v3543_v18 }
 0x1da   :  { %v941_v27 = vpop.f32.mrf.mxu0 }
 0x1db   :  { %v942_v44 = vadd.f32 %v3543_v18, %v941_v27  ;;  %v1034_v9 = vmax.f32 %v950_v39, 0.0 }
 0x1dc   :  { %v2941_v62 = vpop.f32.mrf.mxu0 }
 0x1dd   :  { %v1032_v5 = vmax.f32 %v942_v44, 0.0  ;;  %v953_v6 = vadd.f32 %v2941_v62, %v3543_v18 }
 0x1de   :  { %v944_v63 = vpop.f32.mrf.mxu0 }
 0x1df   :  { %v945_v28 = vadd.f32 %v3543_v18, %v944_v63  ;;  %v1035_v42 = vmax.f32 %v953_v6, 0.0 }
 0x1e1   :  { %v1033_v4 = vmax.f32 %v945_v28, 0.0  ;;  %v3638_v30 = vpack.c.bf16 %v1035_v42, %v1034_v9 }
 0x1e3   :  { %v3631_v8 = vpack.c.bf16 %v1033_v4, %v1032_v5 }
 0x1e5   :  { %1545 = vmatmul.mubr.bf16.gmra.mxu1 %v3631_v8  ;;  %1738 = vmatmul.mubr.bf16.gmra.mxu0 %v3631_v8 }
 0x1e6   :  { %1554 = vmatprep.mubr.bf16.mxu1 %v3075_v7  ;;  %1747 = vmatprep.mubr.bf16.mxu0 %v3075_v7 }
 0x1ed   :  { %1555 = vmatmul.mubr.bf16.gmra.mxu1 %v3638_v30  ;;  %1748 = vmatmul.mubr.bf16.gmra.mxu0 %v3638_v30 }
 0x1ee   :  { %1564 = vmatprep.mubr.bf16.mxu1 %v3075_v7  ;;  %1757 = vmatprep.mubr.bf16.mxu0 %v3075_v7 }
 0x1fd   :  { %v2944_v13 = vpop.f32.mrf.mxu1 }
 0x1fe   :  { %v966_v21 = vadd.f32 %v2944_v13, %v3543_v18 }
 0x1ff   :  { %v957_v37 = vpop.f32.mrf.mxu1 }
 0x200   :  { %v958_v15 = vadd.f32 %v3543_v18, %v957_v37  ;;  %v1038_v22 = vmax.f32 %v966_v21, 0.0 }
 0x201   :  { %v2945_v14 = vpop.f32.mrf.mxu1 }
 0x202   :  { %v1036_v48 = vmax.f32 %v958_v15, 0.0  ;;  %v969_v24 = vadd.f32 %v2945_v14, %v3543_v18 }
 0x203   :  { %v960_v16 = vpop.f32.mrf.mxu1 }
 0x204   :  { %v961_v53 = vadd.f32 %v3543_v18, %v960_v16  ;;  %v1039_v43 = vmax.f32 %v969_v24, 0.0 }
 0x206   :  { %v1037_v17 = vmax.f32 %v961_v53, 0.0  ;;  %v3654_v23 = vpack.c.bf16 %v1039_v43, %v1038_v22 }
 0x208   :  { %v3647_v20 = vpack.c.bf16 %v1037_v17, %v1036_v48 }
 0x20a   :  { %1565 = vmatmul.mubr.bf16.gmra.mxu1 %v3647_v20  ;;  %1758 = vmatmul.mubr.bf16.gmra.mxu0 %v3647_v20 }
 0x20b   :  { %1574 = vmatprep.mubr.bf16.mxu1 %v3075_v7  ;;  %1767 = vmatprep.mubr.bf16.mxu0 %v3075_v7 }
 0x212   :  { %1575 = vmatmul.mubr.bf16.gmra.mxu1 %v3654_v23  ;;  %1768 = vmatmul.mubr.bf16.gmra.mxu0 %v3654_v23 }
 0x213   :  { %1584 = vmatprep.mubr.bf16.mxu1 %v3075_v7  ;;  %1777 = vmatprep.mubr.bf16.mxu0 %v3075_v7 }
 0x21e   :  { %v2948_v26 = vpop.f32.mrf.mxu1 }
 0x21f   :  { %v982_v50 = vadd.f32 %v2948_v26, %v3543_v18 }
 0x220   :  { %v973_v45 = vpop.f32.mrf.mxu1 }
 0x221   :  { %v974_v47 = vadd.f32 %v3543_v18, %v973_v45  ;;  %v1042_v19 = vmax.f32 %v982_v50, 0.0 }
 0x222   :  { %v2949_v58 = vpop.f32.mrf.mxu1 }
 0x223   :  { %v1040_v35 = vmax.f32 %v974_v47, 0.0  ;;  %v985_v29 = vadd.f32 %v2949_v58, %v3543_v18 }
 0x224   :  { %v976_v33 = vpop.f32.mrf.mxu1 }
 0x225   :  { %v977_v41 = vadd.f32 %v3543_v18, %v976_v33  ;;  %v1043_v51 = vmax.f32 %v985_v29, 0.0 }
 0x227   :  { %v1041_v38 = vmax.f32 %v977_v41, 0.0  ;;  %v3670_v55 = vpack.c.bf16 %v1043_v51, %v1042_v19 }
 0x229   :  { %v3663_v25 = vpack.c.bf16 %v1041_v38, %v1040_v35 }
 0x22b   :  { %1585 = vmatmul.mubr.bf16.gmra.mxu1 %v3663_v25  ;;  %1778 = vmatmul.mubr.bf16.gmra.mxu0 %v3663_v25 }
 0x22c   :  { %1594 = vmatprep.mubr.bf16.mxu1 %v3075_v7  ;;  %1787 = vmatprep.mubr.bf16.mxu0 %v3075_v7 }
 0x233   :  { %1595 = vmatmul.mubr.bf16.gmra.mxu1 %v3670_v55  ;;  %1788 = vmatmul.mubr.bf16.gmra.mxu0 %v3670_v55 }
 0x234   :  { %1604 = vmatprep.mubr.bf16.mxu1 %v3075_v7  ;;  %1797 = vmatprep.mubr.bf16.mxu0 %v3075_v7 }
 0x243   :  { %v1679_v56 = vpop.f32.mrf.mxu0  ;;  %v2952_v57 = vpop.f32.mrf.mxu1 }
 0x244   :  { %v998_v32 = vadd.f32 %v2952_v57, %v3543_v18 }
 0x245   :  { %v1681_v27 = vpop.f32.mrf.mxu0  ;;  %v989_v60 = vpop.f32.mrf.mxu1 }
 0x246   :  { %v990_v36 = vadd.f32 %v3543_v18, %v989_v60  ;;  %v1046_v12 = vmax.f32 %v998_v32, 0.0 }
 0x247   :  { %v1683_v1 = vpop.f32.mrf.mxu0  ;;  %v2953_v61 = vpop.f32.mrf.mxu1 }
 0x248   :  { %v2266_v34 = vmax.f32 %v1679_v56, %v1683_v1  ;;  %v1044_v6 = vmax.f32 %v990_v36, 0.0  ;;  %v1001_v10 = vadd.f32 %v2953_v61, %v3543_v18 }
 0x249   :  { %v1685_v62 = vpop.f32.mrf.mxu0  ;;  %v992_v44 = vpop.f32.mrf.mxu1 }
 0x24a   :  { %v993_v63 = vadd.f32 %v3543_v18, %v992_v44  ;;  %v2287_v5 = vmax.f32 %v1681_v27, %v1685_v62  ;;  %v1047_v11 = vmax.f32 %v1001_v10, 0.0 }
 0x24b   :  { %v1689_v28 = vpop.f32.mrf.mxu0 }
 0x24c   :  { %v2267_v4 = vmax.f32 %v2266_v34, %v1689_v28  ;;  %v1045_v39 = vmax.f32 %v993_v63, 0.0  ;;  %v3686_v40 = vpack.c.bf16 %v1047_v11, %v1046_v12 }
 0x24d   :  { %v1691_v42 = vpop.f32.mrf.mxu0 }
 0x24e   :  { %v2288_v9 = vmax.f32 %v2287_v5, %v1691_v42  ;;  %v3679_v52 = vpack.c.bf16 %v1045_v39, %v1044_v6 }
 0x24f   :  { %v1693_v54 = vpop.f32.mrf.mxu0 }
 0x250   :  { %v2268_v49 = vmax.f32 %v2267_v4, %v1693_v54  ;;  %1605 = vmatmul.mubr.bf16.gmra.mxu1 %v3679_v52  ;;  %1798 = vmatmul.mubr.bf16.gmra.mxu0 %v3679_v52 }
 0x251   :  { %1614 = vmatprep.mubr.bf16.mxu1 %v3075_v7  ;;  %1807 = vmatprep.mubr.bf16.mxu0 %v3075_v7  ;;  %v1695_v13 = vpop.f32.mrf.mxu0 }
 0x252   :  { %v2289_v15 = vmax.f32 %v2288_v9, %v1695_v13 }
 0x258   :  { %1615 = vmatmul.mubr.bf16.gmra.mxu1 %v3686_v40  ;;  %1808 = vmatmul.mubr.bf16.gmra.mxu0 %v3686_v40 }
 0x259   :  { %1624 = vmatprep.mubr.bf16.mxu1 %v3075_v7  ;;  %1817 = vmatprep.mubr.bf16.mxu0 %v3075_v7 }
 0x264   :  { %v2956_v37 = vpop.f32.mrf.mxu1  ;;  %v1699_v14 = vpop.f32.mrf.mxu0 }
 0x265   :  { %v2269_v16 = vmax.f32 %v2268_v49, %v1699_v14  ;;  %v1014_v1 = vadd.f32 %v2956_v37, %v3543_v18 }
 0x266   :  { %v1005_v53 = vpop.f32.mrf.mxu1  ;;  %v1701_v48 = vpop.f32.mrf.mxu0 }
 0x267   :  { %v2290_v17 = vmax.f32 %v2289_v15, %v1701_v48  ;;  %v1006_v43 = vadd.f32 %v3543_v18, %v1005_v53  ;;  %v1050_v63 = vmax.f32 %v1014_v1, 0.0 }
 0x268   :  { %v2957_v24 = vpop.f32.mrf.mxu1  ;;  %v1703_v21 = vpop.f32.mrf.mxu0 }
 0x269   :  { %v2270_v22 = vmax.f32 %v2269_v16, %v1703_v21  ;;  %v1048_v41 = vmax.f32 %v1006_v43, 0.0  ;;  %v1017_v19 = vadd.f32 %v2957_v24, %v3543_v18 }
 0x26a   :  { %v1008_v26 = vpop.f32.mrf.mxu1  ;;  %v1705_v45 = vpop.f32.mrf.mxu0 }
 0x26b   :  { %v1009_v58 = vadd.f32 %v3543_v18, %v1008_v26  ;;  %v2291_v38 = vmax.f32 %v2290_v17, %v1705_v45  ;;  %v1051_v62 = vmax.f32 %v1017_v19, 0.0 }
 0x26c   :  { %v1486_v47 = vpop.f32.mrf.mxu1  ;;  %v1709_v33 = vpop.f32.mrf.mxu0 }
 0x26d   :  { %v1049_v35 = vmax.f32 %v1009_v58, 0.0  ;;  %v2271_v29 = vmax.f32 %v2270_v22, %v1709_v33  ;;  %v3702_v6 = vpack.c.bf16 %v1051_v62, %v1050_v63 }
 0x26e   :  { %v1488_v50 = vpop.f32.mrf.mxu1  ;;  %v1711_v51 = vpop.f32.mrf.mxu0 }
 0x26f   :  { %v3695_v56 = vpack.c.bf16 %v1049_v35, %v1048_v41  ;;  %v2292_v57 = vmax.f32 %v2291_v38, %v1711_v51 }
 0x270   :  { %v1490_v27 = vpop.f32.mrf.mxu1  ;;  %v1713_v60 = vpop.f32.mrf.mxu0 }
 0x271   :  { %v2224_v61 = vmax.f32 %v1486_v47, %v1490_v27  ;;  %v2272_v34 = vmax.f32 %v2271_v29, %v1713_v60  ;;  %1625 = vmatmul.mubr.bf16.gmra.mxu1 %v3695_v56  ;;  %1818 = vmatmul.mubr.bf16.gmra.mxu0 %v3695_v56 }
 0x272   :  { %v1492_v36 = vpop.f32.mrf.mxu1  ;;  %1634 = vmatprep.mubr.bf16.mxu1 %v3075_v7  ;;  %1827 = vmatprep.mubr.bf16.mxu0 %v3075_v7  ;;  %v1715_v37 = vpop.f32.mrf.mxu0 }
 0x273   :  { %v2245_v28 = vmax.f32 %v1488_v50, %v1492_v36  ;;  %v2293_v53 = vmax.f32 %v2292_v57, %v1715_v37 }
 0x274   :  { %v1496_v44 = vpop.f32.mrf.mxu1 }
 0x275   :  { %v2225_v5 = vmax.f32 %v2224_v61, %v1496_v44 }
 0x276   :  { %v1498_v4 = vpop.f32.mrf.mxu1 }
 0x277   :  { %v2246_v18 = vmax.f32 %v2245_v28, %v1498_v4 }
 0x278   :  { %v1500_v39 = vpop.f32.mrf.mxu1 }
 0x279   :  { %v2226_v42 = vmax.f32 %v2225_v5, %v1500_v39  ;;  %1635 = vmatmul.mubr.bf16.gmra.mxu1 %v3702_v6  ;;  %1828 = vmatmul.mubr.bf16.gmra.mxu0 %v3702_v6 }
 0x27a   :  { %v1502_v9 = vpop.f32.mrf.mxu1  ;;  %1870 = vmatprep.mubr.bf16.mxu1 %v3075_v7  ;;  %2063 = vmatprep.mubr.bf16.mxu0 %v3075_v7 }
 0x27b   :  { %v2247_v54 = vmax.f32 %v2246_v18, %v1502_v9 }
 0x27c   :  { %v1506_v10 = vpop.f32.mrf.mxu1 }
 0x27d   :  { %v2227_v49 = vmax.f32 %v2226_v42, %v1506_v10 }
 0x27e   :  { %v1508_v32 = vpop.f32.mrf.mxu1 }
 0x27f   :  { %v2248_v11 = vmax.f32 %v2247_v54, %v1508_v32 }
 0x280   :  { %v1510_v12 = vpop.f32.mrf.mxu1 }
 0x281   :  { %v2228_v13 = vmax.f32 %v2227_v49, %v1510_v12  ;;  %1871 = vmatmul.mubr.bf16.vlgmr.msra.gmra.mxu1 %v3552_v2  ;;  %2064 = vmatmul.mubr.bf16.vlgmr.msra.gmra.mxu0 %v3552_v2 }
 0x282   :  { %v1512_v14 = vpop.f32.mrf.mxu1  ;;  %1880 = vmatprep.mubr.bf16.mxu1 %v3075_v7  ;;  %2073 = vmatprep.mubr.bf16.mxu0 %v3075_v7 }
 0x283   :  { %v2249_v48 = vmax.f32 %v2248_v11, %v1512_v14 }
 0x284   :  { %v1516_v15 = vpop.f32.mrf.mxu1  ;;  %v1719_v16 = vpop.f32.mrf.mxu0 }
 0x285   :  { %v2229_v17 = vmax.f32 %v2228_v13, %v1516_v15  ;;  %v2273_v24 = vmax.f32 %v2272_v34, %v1719_v16 }
 0x286   :  { %v1518_v21 = vpop.f32.mrf.mxu1  ;;  %v1721_v43 = vpop.f32.mrf.mxu0 }
 0x287   :  { %v2250_v22 = vmax.f32 %v2249_v48, %v1518_v21  ;;  %v2294_v26 = vmax.f32 %v2293_v53, %v1721_v43 }
 0x288   :  { %v1520_v45 = vpop.f32.mrf.mxu1  ;;  %v1723_v58 = vpop.f32.mrf.mxu0 }
 0x289   :  { %v2230_v47 = vmax.f32 %v2229_v17, %v1520_v45  ;;  %v2274_v2 = vmax.f32 %v2273_v24, %v1723_v58  ;;  %1881 = vmatmul.mubr.bf16.gmra.mxu1 %v3564_v0  ;;  %2074 = vmatmul.mubr.bf16.gmra.mxu0 %v3564_v0 }
 0x28a   :  { %v1522_v33 = vpop.f32.mrf.mxu1  ;;  %v1725_v41 = vpop.f32.mrf.mxu0  ;;  %1890 = vmatprep.mubr.bf16.mxu1 %v3075_v7  ;;  %2083 = vmatprep.mubr.bf16.mxu0 %v3075_v7 }
 0x28b   :  { %v2295_v35 = vmax.f32 %v2294_v26, %v1725_v41  ;;  %v2251_v50 = vmax.f32 %v2250_v22, %v1522_v33 }
 0x28c   :  { %v1526_v38 = vpop.f32.mrf.mxu1  ;;  %v1729_v29 = vpop.f32.mrf.mxu0 }
 0x28d   :  { %v2231_v51 = vmax.f32 %v2230_v47, %v1526_v38  ;;  %v2275_v19 = vmax.f32 %v2274_v2, %v1729_v29 }
 0x28e   :  { %v1528_v57 = vpop.f32.mrf.mxu1  ;;  %v1731_v27 = vpop.f32.mrf.mxu0 }
 0x28f   :  { %v2252_v60 = vmax.f32 %v2251_v50, %v1528_v57  ;;  %v2296_v1 = vmax.f32 %v2295_v35, %v1731_v27 }
 0x290   :  { %v1530_v61 = vpop.f32.mrf.mxu1  ;;  %v1733_v34 = vpop.f32.mrf.mxu0 }
 0x291   :  { %v2232_v36 = vmax.f32 %v2231_v51, %v1530_v61  ;;  %v2276_v0 = vmax.f32 %v2275_v19, %v1733_v34  ;;  %1891 = vmatmul.mubr.bf16.gmra.mxu1 %v3591_v59  ;;  %2084 = vmatmul.mubr.bf16.gmra.mxu0 %v3591_v59  ;;  %v3076_v34 = vmov 1983009808  }
 0x292   :  { %v1532_v62 = vpop.f32.mrf.mxu1  ;;  %v1735_v44 = vpop.f32.mrf.mxu0  ;;  %1900 = vmatprep.mubr.bf16.mxu1 %v3075_v7  ;;  %2093 = vmatprep.mubr.bf16.mxu0 %v3075_v7 }
 0x293   :  { %v2253_v63 = vmax.f32 %v2252_v60, %v1532_v62  ;;  %v2297_v28 = vmax.f32 %v2296_v1, %v1735_v44 }
 0x294   :  { %v1536_v5 = vpop.f32.mrf.mxu1 }
 0x295   :  { %v2233_v4 = vmax.f32 %v2232_v36, %v1536_v5  ;;  %v2583_v36 = vunpack.c.l.s4 %v3076_v34 }
 0x296   :  { %v1538_v18 = vpop.f32.mrf.mxu1 }
 0x297   :  { %v2254_v39 = vmax.f32 %v2253_v63, %v1538_v18 }
 0x298   :  { %v1540_v42 = vpop.f32.mrf.mxu1 }
 0x299   :  { %v2234_v9 = vmax.f32 %v2233_v4, %v1540_v42  ;;  %1901 = vmatmul.mubr.bf16.gmra.mxu1 %v3598_v3  ;;  %2094 = vmatmul.mubr.bf16.gmra.mxu0 %v3598_v3 }
 0x29a   :  { %v1542_v10 = vpop.f32.mrf.mxu1  ;;  %1910 = vmatprep.mubr.bf16.mxu1 %v3075_v7  ;;  %2103 = vmatprep.mubr.bf16.mxu0 %v3075_v7 }
 0x29b   :  { %v2255_v59 = vmax.f32 %v2254_v39, %v1542_v10  ;;  %v2584_v39 = vunpack.c.0.s8 %v2583_v36 }
 0x2a1   :  { %1911 = vmatmul.mubr.bf16.gmra.mxu1 %v3613_v31  ;;  %2104 = vmatmul.mubr.bf16.gmra.mxu0 %v3613_v31 }
 0x2a2   :  { %1920 = vmatprep.mubr.bf16.mxu1 %v3075_v7  ;;  %2113 = vmatprep.mubr.bf16.mxu0 %v3075_v7 }
 0x2a5   :  { %v1546_v54 = vpop.f32.mrf.mxu1  ;;  %v1739_v49 = vpop.f32.mrf.mxu0 }
 0x2a6   :  { %v2235_v32 = vmax.f32 %v2234_v9, %v1546_v54  ;;  %v2277_v11 = vmax.f32 %v2276_v0, %v1739_v49  ;;  %v2585_v0 = vlaneseq }
 0x2a7   :  { %v1548_v12 = vpop.f32.mrf.mxu1  ;;  %v1741_v3 = vpop.f32.mrf.mxu0 }
 0x2a8   :  { %v2256_v13 = vmax.f32 %v2255_v59, %v1548_v12  ;;  %v2298_v37 = vmax.f32 %v2297_v28, %v1741_v3  ;;  %v2586_v42 = vshrl.u32 %v2585_v0, 7 }
 0x2a9   :  { %v1550_v14 = vpop.f32.mrf.mxu1  ;;  %v1743_v15 = vpop.f32.mrf.mxu0  ;;  %1921 = vmatmul.mubr.bf16.gmra.mxu1 %v3620_v46  ;;  %2114 = vmatmul.mubr.bf16.gmra.mxu0 %v3620_v46 }
 0x2aa   :  { %v2236_v16 = vmax.f32 %v2235_v32, %v1550_v14  ;;  %v2278_v31 = vmax.f32 %v2277_v11, %v1743_v15  ;;  %1930 = vmatprep.mubr.bf16.mxu1 %v3075_v7  ;;  %2123 = vmatprep.mubr.bf16.mxu0 %v3075_v7  ;;  %v3740_v11 = vsub.s32 %v2584_v39, %v2586_v42 }
 0x2ab   :  { %v1552_v53 = vpop.f32.mrf.mxu1  ;;  %v1745_v48 = vpop.f32.mrf.mxu0 }
 0x2ac   :  { %v2257_v17 = vmax.f32 %v2256_v13, %v1552_v53  ;;  %v2299_v24 = vmax.f32 %v2298_v37, %v1745_v48 }
 0x2ad   :  { %v1556_v21 = vpop.f32.mrf.mxu1  ;;  %v1749_v43 = vpop.f32.mrf.mxu0 }
 0x2ae   :  { %v2237_v22 = vmax.f32 %v2236_v16, %v1556_v21  ;;  %v2279_v26 = vmax.f32 %v2278_v31, %v1749_v43 }
 0x2af   :  { %v1558_v45 = vpop.f32.mrf.mxu1  ;;  %v1751_v58 = vpop.f32.mrf.mxu0 }
 0x2b0   :  { %v2258_v47 = vmax.f32 %v2257_v17, %v1558_v45  ;;  %v2300_v2 = vmax.f32 %v2299_v24, %v1751_v58 }
 0x2b1   :  { %v1560_v33 = vpop.f32.mrf.mxu1  ;;  %v1753_v46 = vpop.f32.mrf.mxu0  ;;  %1931 = vmatmul.mubr.bf16.gmra.mxu1 %v3631_v8  ;;  %2124 = vmatmul.mubr.bf16.gmra.mxu0 %v3631_v8 }
 0x2b2   :  { %v2238_v41 = vmax.f32 %v2237_v22, %v1560_v33  ;;  %v2280_v35 = vmax.f32 %v2279_v26, %v1753_v46  ;;  %1940 = vmatprep.mubr.bf16.mxu1 %v3075_v7  ;;  %2133 = vmatprep.mubr.bf16.mxu0 %v3075_v7 }
 0x2b3   :  { %v1562_v38 = vpop.f32.mrf.mxu1  ;;  %v1755_v29 = vpop.f32.mrf.mxu0 }
 0x2b4   :  { %v2239_v50 = vrot.slane %v2238_v41, 4  ;;  %v2281_v51 = vrot.slane %v2280_v35, 4  ;;  %v2259_v19 = vmax.f32 %v2258_v47, %v1562_v38  ;;  %v2301_v57 = vmax.f32 %v2300_v2, %v1755_v29 }
 0x2b6   :  { %v2240_v27 = vmax.f32 %v2238_v41, %v2239_v50  ;;  %v2282_v60 = vmax.f32 %v2280_v35, %v2281_v51  ;;  %v2260_v1 = vrot.slane %v2259_v19, 4  ;;  %v2302_v61 = vrot.slane %v2301_v57, 4 }
 0x2b8   :  { %v2241_v8 = vrot.slane %v2240_v27, 2  ;;  %v2283_v62 = vrot.slane %v2282_v60, 2  ;;  %v2261_v44 = vmax.f32 %v2259_v19, %v2260_v1  ;;  %v2303_v63 = vmax.f32 %v2301_v57, %v2302_v61 }
 0x2b9   :  { %1941 = vmatmul.mubr.bf16.gmra.mxu1 %v3638_v30  ;;  %2134 = vmatmul.mubr.bf16.gmra.mxu0 %v3638_v30 }
 0x2ba   :  { %v2242_v28 = vmax.f32 %v2240_v27, %v2241_v8  ;;  %v2284_v5 = vmax.f32 %v2282_v60, %v2283_v62  ;;  %v2262_v4 = vrot.slane %v2261_v44, 2  ;;  %v2304_v18 = vrot.slane %v2303_v63, 2  ;;  %1950 = vmatprep.mubr.bf16.mxu1 %v3075_v7  ;;  %2143 = vmatprep.mubr.bf16.mxu0 %v3075_v7 }
 0x2bc   :  { %v2243_v9 = vrot.slane %v2242_v28, 1  ;;  %v2285_v10 = vrot.slane %v2284_v5, 1  ;;  %v2263_v59 = vmax.f32 %v2261_v44, %v2262_v4  ;;  %v2305_v54 = vmax.f32 %v2303_v63, %v2304_v18 }
 0x2be   :  { %v2264_v49 = vrot.slane %v2263_v59, 1  ;;  %v2306_v32 = vrot.slane %v2305_v54, 1  ;;  %v2244_v12 = vmax.f32 %v2242_v28, %v2243_v9  ;;  %v2286_v30 = vmax.f32 %v2284_v5, %v2285_v10 }
 0x2c0   :  { %v2265_v3 = vmax.f32 %v2263_v59, %v2264_v49  ;;  %v2307_v13 = vmax.f32 %v2305_v54, %v2306_v32 }
 0x2c1   :  { %1951 = vmatmul.mubr.bf16.gmra.mxu1 %v3647_v20  ;;  %2144 = vmatmul.mubr.bf16.gmra.mxu0 %v3647_v20 }
 0x2c2   :  { %v2580_v37 = vcombine.low %v2244_v12, %v2265_v3  ;;  %v2581_v14 = vcombine.low %v2286_v30, %v2307_v13  ;;  %1960 = vmatprep.mubr.bf16.mxu1 %v3075_v7  ;;  %2153 = vmatprep.mubr.bf16.mxu0 %v3075_v7 }
 0x2c4   :  { %v3747_v15 = vrot.slane %v2580_v37, %v3740_v11  ;;  %v3750_v16 = vrot.slane %v2581_v14, %v3740_v11 }
 0x2c6   :  { %v2596_v31 = vcombine.low %v3747_v15, %v3750_v16 }
 0x2c9   :  { %1961 = vmatmul.mubr.bf16.gmra.mxu1 %v3654_v23  ;;  %2154 = vmatmul.mubr.bf16.gmra.mxu0 %v3654_v23 }
 0x2ca   :  { %1970 = vmatprep.mubr.bf16.mxu1 %v3075_v7  ;;  %2163 = vmatprep.mubr.bf16.mxu0 %v3075_v7  ;;  %v3762_v20 = vpop.f32.mrf.mxu1  ;;  %v3764_v53 = vpop.f32.mrf.mxu0 }
 0x2cc   :  { %v1568_v23 = vpop.f32.mrf.mxu1  ;;  %v1761_v48 = vpop.f32.mrf.mxu0 }
 0x2ce   :  { %v1570_v17 = vpop.f32.mrf.mxu1 }
 0x2cf   :  { %v2392_v44 = vmax.f32 %v3762_v20, %v1570_v17 }
 0x2d0   :  { %v1572_v24 = vpop.f32.mrf.mxu1 }
 0x2d1   :  { %1971 = vmatmul.mubr.bf16.gmra.mxu1 %v3663_v25  ;;  %2164 = vmatmul.mubr.bf16.gmra.mxu0 %v3663_v25  ;;  %v1763_v25 = vpop.f32.mrf.mxu0  ;;  %v2413_v4 = vmax.f32 %v1568_v23, %v1572_v24 }
 0x2d2   :  { %1980 = vmatprep.mubr.bf16.mxu1 %v3075_v7  ;;  %2173 = vmatprep.mubr.bf16.mxu0 %v3075_v7  ;;  %v1576_v43 = vpop.f32.mrf.mxu1  ;;  %v2434_v63 = vmax.f32 %v3764_v53, %v1763_v25 }
 0x2d3   :  { %v1765_v21 = vpop.f32.mrf.mxu0  ;;  %v2393_v39 = vmax.f32 %v2392_v44, %v1576_v43 }
 0x2d4   :  { %v1578_v22 = vpop.f32.mrf.mxu1  ;;  %v2455_v18 = vmax.f32 %v1761_v48, %v1765_v21 }
 0x2d5   :  { %v2414_v9 = vmax.f32 %v2413_v4, %v1578_v22 }
 0x2d6   :  { %v1580_v45 = vpop.f32.mrf.mxu1 }
 0x2d7   :  { %v2394_v59 = vmax.f32 %v2393_v39, %v1580_v45 }
 0x2d8   :  { %v1582_v58 = vpop.f32.mrf.mxu1 }
 0x2d9   :  { %1981 = vmatmul.mubr.bf16.gmra.mxu1 %v3670_v55  ;;  %2174 = vmatmul.mubr.bf16.gmra.mxu0 %v3670_v55  ;;  %v1769_v55 = vpop.f32.mrf.mxu0  ;;  %v2415_v12 = vmax.f32 %v2414_v9, %v1582_v58 }
 0x2da   :  { %1990 = vmatprep.mubr.bf16.mxu1 %v3075_v7  ;;  %2183 = vmatprep.mubr.bf16.mxu0 %v3075_v7  ;;  %v2435_v42 = vmax.f32 %v2434_v63, %v1769_v55 }
 0x2db   :  { %v1771_v26 = vpop.f32.mrf.mxu0 }
 0x2dc   :  { %v2456_v10 = vmax.f32 %v2455_v18, %v1771_v26 }
 0x2e1   :  { %1991 = vmatmul.mubr.bf16.gmra.mxu1 %v3679_v52  ;;  %2184 = vmatmul.mubr.bf16.gmra.mxu0 %v3679_v52  ;;  %v1773_v52 = vpop.f32.mrf.mxu0 }
 0x2e2   :  { %2000 = vmatprep.mubr.bf16.mxu1 %v3075_v7  ;;  %2193 = vmatprep.mubr.bf16.mxu0 %v3075_v7  ;;  %v2436_v54 = vmax.f32 %v2435_v42, %v1773_v52 }
 0x2e3   :  { %v1775_v47 = vpop.f32.mrf.mxu0 }
 0x2e4   :  { %v2457_v30 = vmax.f32 %v2456_v10, %v1775_v47 }
 0x2e9   :  { %2001 = vmatmul.mubr.bf16.gmra.mxu1 %v3686_v40  ;;  %2194 = vmatmul.mubr.bf16.gmra.mxu0 %v3686_v40 }
 0x2ea   :  { %2010 = vmatprep.mubr.bf16.mxu1 %v3075_v7  ;;  %2203 = vmatprep.mubr.bf16.mxu0 %v3075_v7 }
 0x2eb   :  { %v1586_v2 = vpop.f32.mrf.mxu1  ;;  %v1779_v40 = vpop.f32.mrf.mxu0 }
 0x2ec   :  { %v2395_v3 = vmax.f32 %v2394_v59, %v1586_v2  ;;  %v2437_v13 = vmax.f32 %v2436_v54, %v1779_v40 }
 0x2ed   :  { %v1588_v33 = vpop.f32.mrf.mxu1  ;;  %v1781_v46 = vpop.f32.mrf.mxu0 }
 0x2ee   :  { %v2416_v37 = vmax.f32 %v2415_v12, %v1588_v33  ;;  %v2458_v14 = vmax.f32 %v2457_v30, %v1781_v46 }
 0x2ef   :  { %v1590_v41 = vpop.f32.mrf.mxu1  ;;  %v1783_v35 = vpop.f32.mrf.mxu0 }
 0x2f0   :  { %v2396_v20 = vmax.f32 %v2395_v3, %v1590_v41  ;;  %v2438_v53 = vmax.f32 %v2437_v13, %v1783_v35 }
 0x2f1   :  { %2011 = vmatmul.mubr.bf16.gmra.mxu1 %v3695_v56  ;;  %2204 = vmatmul.mubr.bf16.gmra.mxu0 %v3695_v56  ;;  %v1592_v38 = vpop.f32.mrf.mxu1  ;;  %v1785_v29 = vpop.f32.mrf.mxu0 }
 0x2f2   :  { %2020 = vmatprep.mubr.bf16.mxu1 %v3075_v7  ;;  %2213 = vmatprep.mubr.bf16.mxu0 %v3075_v7  ;;  %v2417_v23 = vmax.f32 %v2416_v37, %v1592_v38  ;;  %v2459_v48 = vmax.f32 %v2458_v14, %v1785_v29 }
 0x2f3   :  { %v1596_v50 = vpop.f32.mrf.mxu1  ;;  %v1789_v56 = vpop.f32.mrf.mxu0 }
 0x2f4   :  { %v2397_v24 = vmax.f32 %v2396_v20, %v1596_v50  ;;  %v2439_v21 = vmax.f32 %v2438_v53, %v1789_v56 }
 0x2f5   :  { %v1598_v51 = vpop.f32.mrf.mxu1  ;;  %v1791_v19 = vpop.f32.mrf.mxu0 }
 0x2f6   :  { %v2418_v43 = vmax.f32 %v2417_v23, %v1598_v51  ;;  %v2460_v55 = vmax.f32 %v2459_v48, %v1791_v19 }
 0x2f7   :  { %v1600_v57 = vpop.f32.mrf.mxu1  ;;  %v1793_v7 = vpop.f32.mrf.mxu0 }
 0x2f8   :  { %v2398_v22 = vmax.f32 %v2397_v24, %v1600_v57  ;;  %v2440_v26 = vmax.f32 %v2439_v21, %v1793_v7 }
 0x2f9   :  { %2021 = vmatmul.mubr.bf16.gmra.mxu1 %v3702_v6  ;;  %2214 = vmatmul.mubr.bf16.gmra.mxu0 %v3702_v6  ;;  %v1602_v27 = vpop.f32.mrf.mxu1  ;;  %v1795_v60 = vpop.f32.mrf.mxu0 }
 0x2fa   :  { %v2419_v58 = vmax.f32 %v2418_v43, %v1602_v27  ;;  %v2461_v47 = vmax.f32 %v2460_v55, %v1795_v60 }
 0x310   :  { %v1606_v1 = vpop.f32.mrf.mxu1  ;;  %v1799_v61 = vpop.f32.mrf.mxu0 }
 0x311   :  { %v2399_v2 = vmax.f32 %v2398_v22, %v1606_v1  ;;  %v2441_v40 = vmax.f32 %v2440_v26, %v1799_v61 }
 0x312   :  { %v1608_v34 = vpop.f32.mrf.mxu1  ;;  %v1801_v36 = vpop.f32.mrf.mxu0 }
 0x313   :  { %v2420_v41 = vmax.f32 %v2419_v58, %v1608_v34  ;;  %v2462_v35 = vmax.f32 %v2461_v47, %v1801_v36 }
 0x314   :  { %v1610_v0 = vpop.f32.mrf.mxu1  ;;  %v1803_v8 = vpop.f32.mrf.mxu0 }
 0x315   :  { %v2400_v44 = vmax.f32 %v2399_v2, %v1610_v0  ;;  %v2442_v63 = vmax.f32 %v2441_v40, %v1803_v8 }
 0x316   :  { %v1612_v62 = vpop.f32.mrf.mxu1  ;;  %v1805_v6 = vpop.f32.mrf.mxu0 }
 0x317   :  { %v2421_v50 = vmax.f32 %v2420_v41, %v1612_v62  ;;  %v2463_v56 = vmax.f32 %v2462_v35, %v1805_v6 }
 0x318   :  { %v1616_v28 = vpop.f32.mrf.mxu1  ;;  %v1809_v5 = vpop.f32.mrf.mxu0 }
 0x319   :  { %v2401_v51 = vmax.f32 %v2400_v44, %v1616_v28  ;;  %v2443_v19 = vmax.f32 %v2442_v63, %v1809_v5 }
 0x31a   :  { %v1618_v49 = vpop.f32.mrf.mxu1  ;;  %v1811_v32 = vpop.f32.mrf.mxu0 }
 0x31b   :  { %v2422_v4 = vmax.f32 %v2421_v50, %v1618_v49  ;;  %v2464_v18 = vmax.f32 %v2463_v56, %v1811_v32 }
 0x31c   :  { %v1620_v17 = vpop.f32.mrf.mxu1  ;;  %v1813_v25 = vpop.f32.mrf.mxu0 }
 0x31d   :  { %v2402_v27 = vmax.f32 %v2401_v51, %v1620_v17  ;;  %v2444_v60 = vmax.f32 %v2443_v19, %v1813_v25 }
 0x31e   :  { %v1622_v45 = vpop.f32.mrf.mxu1  ;;  %v1815_v52 = vpop.f32.mrf.mxu0 }
 0x31f   :  { %v2423_v39 = vmax.f32 %v2422_v4, %v1622_v45  ;;  %v2465_v42 = vmax.f32 %v2464_v18, %v1815_v52 }
 0x331   :  { %v1626_v33 = vpop.f32.mrf.mxu1  ;;  %v1819_v46 = vpop.f32.mrf.mxu0 }
 0x332   :  { %v2403_v34 = vmax.f32 %v2402_v27, %v1626_v33  ;;  %v2445_v36 = vmax.f32 %v2444_v60, %v1819_v46 }
 0x333   :  { %v1628_v38 = vpop.f32.mrf.mxu1  ;;  %v1821_v29 = vpop.f32.mrf.mxu0 }
 0x334   :  { %v2424_v9 = vmax.f32 %v2423_v39, %v1628_v38  ;;  %v2466_v10 = vmax.f32 %v2465_v42, %v1821_v29 }
 0x335   :  { %v1630_v57 = vpop.f32.mrf.mxu1  ;;  %v1823_v7 = vpop.f32.mrf.mxu0 }
 0x336   :  { %v2404_v62 = vmax.f32 %v2403_v34, %v1630_v57  ;;  %v2446_v6 = vmax.f32 %v2445_v36, %v1823_v7 }
 0x337   :  { %v1632_v1 = vpop.f32.mrf.mxu1  ;;  %v1825_v61 = vpop.f32.mrf.mxu0 }
 0x338   :  { %v2425_v59 = vmax.f32 %v2424_v9, %v1632_v1  ;;  %v2467_v54 = vmax.f32 %v2466_v10, %v1825_v61 }
 0x339   :  { %v1636_v0 = vpop.f32.mrf.mxu1  ;;  %v1829_v8 = vpop.f32.mrf.mxu0 }
 0x33a   :  { %v2405_v49 = vmax.f32 %v2404_v62, %v1636_v0  ;;  %v2447_v32 = vmax.f32 %v2446_v6, %v1829_v8 }
 0x33b   :  { %v1638_v28 = vpop.f32.mrf.mxu1  ;;  %v1831_v5 = vpop.f32.mrf.mxu0 }
 0x33c   :  { %v2426_v3 = vmax.f32 %v2425_v59, %v1638_v28  ;;  %v2468_v13 = vmax.f32 %v2467_v54, %v1831_v5 }
 0x33d   :  { %v1640_v12 = vpop.f32.mrf.mxu1  ;;  %v1833_v30 = vpop.f32.mrf.mxu0 }
 0x33e   :  { %v2406_v37 = vmax.f32 %v2405_v49, %v1640_v12  ;;  %v2448_v14 = vmax.f32 %v2447_v32, %v1833_v30 }
 0x33f   :  { %v1642_v20 = vpop.f32.mrf.mxu1  ;;  %v1835_v53 = vpop.f32.mrf.mxu0 }
 0x340   :  { %v2407_v17 = vrot.slane %v2406_v37, 4  ;;  %v2449_v25 = vrot.slane %v2448_v14, 4  ;;  %v2427_v23 = vmax.f32 %v2426_v3, %v1642_v20  ;;  %v2469_v48 = vmax.f32 %v2468_v13, %v1835_v53 }
 0x341   :  { %v1872_v24 = vpop.f32.mrf.mxu1  ;;  %v2065_v21 = vpop.f32.mrf.mxu0 }
 0x342   :  { %v2408_v43 = vmax.f32 %v2406_v37, %v2407_v17  ;;  %v2450_v55 = vmax.f32 %v2448_v14, %v2449_v25  ;;  %v2428_v22 = vrot.slane %v2427_v23, 4  ;;  %v2470_v26 = vrot.slane %v2469_v48, 4 }
 0x343   :  { %v1874_v45 = vpop.f32.mrf.mxu1  ;;  %v2067_v52 = vpop.f32.mrf.mxu0 }
 0x344   :  { %v2409_v58 = vrot.slane %v2408_v43, 2  ;;  %v2451_v47 = vrot.slane %v2450_v55, 2  ;;  %v2429_v2 = vmax.f32 %v2427_v23, %v2428_v22  ;;  %v2471_v40 = vmax.f32 %v2469_v48, %v2470_v26 }
 0x345   :  { %v1876_v33 = vpop.f32.mrf.mxu1  ;;  %v2069_v46 = vpop.f32.mrf.mxu0 }
 0x346   :  { %v2410_v41 = vmax.f32 %v2408_v43, %v2409_v58  ;;  %v2452_v35 = vmax.f32 %v2450_v55, %v2451_v47  ;;  %v2430_v44 = vrot.slane %v2429_v2, 2  ;;  %v2472_v63 = vrot.slane %v2471_v40, 2 }
 0x347   :  { %v2308_v38 = vmax.f32 %v1872_v24, %v1876_v33  ;;  %v2350_v29 = vmax.f32 %v2065_v21, %v2069_v46  ;;  %v1878_v50 = vpop.f32.mrf.mxu1  ;;  %v2071_v56 = vpop.f32.mrf.mxu0 }
 0x348   :  { %v2411_v51 = vrot.slane %v2410_v41, 1  ;;  %v2453_v19 = vrot.slane %v2452_v35, 1  ;;  %v2431_v57 = vmax.f32 %v2429_v2, %v2430_v44  ;;  %v2473_v7 = vmax.f32 %v2471_v40, %v2472_v63 }
 0x349   :  { %v2329_v4 = vmax.f32 %v1874_v45, %v1878_v50  ;;  %v2371_v18 = vmax.f32 %v2067_v52, %v2071_v56  ;;  %v1882_v27 = vpop.f32.mrf.mxu1  ;;  %v2075_v60 = vpop.f32.mrf.mxu0 }
 0x34a   :  { %v2432_v1 = vrot.slane %v2431_v57, 1  ;;  %v2474_v61 = vrot.slane %v2473_v7, 1  ;;  %v2412_v39 = vmax.f32 %v2410_v41, %v2411_v51  ;;  %v2454_v42 = vmax.f32 %v2452_v35, %v2453_v19 }
 0x34b   :  { %v2309_v34 = vmax.f32 %v2308_v38, %v1882_v27  ;;  %v2351_v36 = vmax.f32 %v2350_v29, %v2075_v60  ;;  %v1884_v0 = vpop.f32.mrf.mxu1  ;;  %v2077_v8 = vpop.f32.mrf.mxu0 }
 0x34c   :  { %v2433_v9 = vmax.f32 %v2431_v57, %v2432_v1  ;;  %v2475_v10 = vmax.f32 %v2473_v7, %v2474_v61  ;;  %v2330_v62 = vmax.f32 %v2329_v4, %v1884_v0  ;;  %v2372_v6 = vmax.f32 %v2371_v18, %v2077_v8 }
 0x34d   :  { %v1886_v28 = vpop.f32.mrf.mxu1  ;;  %v2079_v5 = vpop.f32.mrf.mxu0 }
 0x34e   :  { %v2614_v59 = vcombine.low %v2412_v39, %v2433_v9  ;;  %v2615_v54 = vcombine.low %v2454_v42, %v2475_v10  ;;  %v2310_v49 = vmax.f32 %v2309_v34, %v1886_v28  ;;  %v2352_v32 = vmax.f32 %v2351_v36, %v2079_v5 }
 0x34f   :  { %v1888_v12 = vpop.f32.mrf.mxu1  ;;  %v2081_v30 = vpop.f32.mrf.mxu0 }
 0x350   :  { %v2622_v3 = vrot.slane %v2614_v59, %v3740_v11  ;;  %v2629_v13 = vrot.slane %v2615_v54, %v3740_v11  ;;  %v2331_v37 = vmax.f32 %v2330_v62, %v1888_v12  ;;  %v2373_v14 = vmax.f32 %v2372_v6, %v2081_v30 }
 0x351   :  { %v1892_v20 = vpop.f32.mrf.mxu1  ;;  %v2085_v53 = vpop.f32.mrf.mxu0 }
 0x352   :  { %v2630_v17 = vcombine.low %v2622_v3, %v2629_v13  ;;  %v2311_v25 = vmax.f32 %v2310_v49, %v1892_v20  ;;  %v2353_v23 = vmax.f32 %v2352_v32, %v2085_v53 }
 0x353   :  { %v1894_v48 = vpop.f32.mrf.mxu1  ;;  %v2087_v24 = vpop.f32.mrf.mxu0 }
 0x354   :  { %v2332_v21 = vmax.f32 %v2331_v37, %v1894_v48  ;;  %v2374_v43 = vmax.f32 %v2373_v14, %v2087_v24  ;;  %v2652_v55 = vrot.slane %v2630_v17, 7 }
 0x355   :  { %v1896_v22 = vpop.f32.mrf.mxu1  ;;  %v2089_v26 = vpop.f32.mrf.mxu0 }
 0x356   :  { %v2312_v45 = vmax.f32 %v2311_v25, %v1896_v22  ;;  %v2354_v52 = vmax.f32 %v2353_v23, %v2089_v26  ;;  %v2654_v58 = vsel %vm2653_vm1, %v2652_v55, %v2596_v31 }
 0x357   :  { %v1898_v47 = vpop.f32.mrf.mxu1  ;;  %v2091_v2 = vpop.f32.mrf.mxu0  ;;  %v2656_v40 = vsel %vm2655_vm2, %v2652_v55, %v2654_v58 }
 0x358   :  { %v2333_v33 = vmax.f32 %v2332_v21, %v1898_v47  ;;  %v2375_v46 = vmax.f32 %v2374_v43, %v2091_v2  ;;  %v2658_v41 = vsel %vm2657_vm3, %v2652_v55, %v2656_v40 }
 0x359   :  { %v1902_v35 = vpop.f32.mrf.mxu1  ;;  %v2095_v44 = vpop.f32.mrf.mxu0  ;;  %v2660_v63 = vsel %vm2659_vm4, %v2652_v55, %v2658_v41 }
 0x35a   :  { %v2313_v38 = vmax.f32 %v2312_v45, %v1902_v35  ;;  %v2355_v29 = vmax.f32 %v2354_v52, %v2095_v44  ;;  %2670 = vst [vmem:[#allocation5] sm:$0xff] %v2660_v63 }
 0x35b   :  { %v1904_v50 = vpop.f32.mrf.mxu1  ;;  %v2097_v15 = vpop.f32.mrf.mxu0 }
 0x35c   :  { %v2334_v16 = vmax.f32 %v2333_v33, %v1904_v50  ;;  %v2376_v31 = vmax.f32 %v2375_v46, %v2097_v15 }
 0x35d   :  { %v1906_v56 = vpop.f32.mrf.mxu1  ;;  %v2099_v51 = vpop.f32.mrf.mxu0 }
 0x35e   :  { %v2314_v19 = vmax.f32 %v2313_v38, %v1906_v56  ;;  %v2356_v57 = vmax.f32 %v2355_v29, %v2099_v51 }
 0x35f   :  { %v1908_v7 = vpop.f32.mrf.mxu1  ;;  %v2101_v4 = vpop.f32.mrf.mxu0 }
 0x360   :  { %v2335_v18 = vmax.f32 %v2334_v16, %v1908_v7  ;;  %v2377_v27 = vmax.f32 %v2376_v31, %v2101_v4 }
 0x361   :  { %v1912_v60 = vpop.f32.mrf.mxu1  ;;  %v2105_v1 = vpop.f32.mrf.mxu0 }
 0x362   :  { %v2315_v61 = vmax.f32 %v2314_v19, %v1912_v60  ;;  %v2357_v39 = vmax.f32 %v2356_v57, %v2105_v1 }
 0x363   :  { %v1914_v42 = vpop.f32.mrf.mxu1  ;;  %v2107_v34 = vpop.f32.mrf.mxu0 }
 0x364   :  { %v2336_v36 = vmax.f32 %v2335_v18, %v1914_v42  ;;  %v2378_v0 = vmax.f32 %v2377_v27, %v2107_v34 }
 0x365   :  { %v1916_v8 = vpop.f32.mrf.mxu1  ;;  %v2109_v9 = vpop.f32.mrf.mxu0 }
 0x366   :  { %v2316_v10 = vmax.f32 %v2315_v61, %v1916_v8  ;;  %v2358_v62 = vmax.f32 %v2357_v39, %v2109_v9 }
 0x367   :  { %v1918_v6 = vpop.f32.mrf.mxu1  ;;  %v2111_v28 = vpop.f32.mrf.mxu0 }
 0x368   :  { %v2337_v5 = vmax.f32 %v2336_v36, %v1918_v6  ;;  %v2379_v59 = vmax.f32 %v2378_v0, %v2111_v28 }
 0x369   :  { %v1922_v54 = vpop.f32.mrf.mxu1  ;;  %v2115_v49 = vpop.f32.mrf.mxu0 }
 0x36a   :  { %v2317_v32 = vmax.f32 %v2316_v10, %v1922_v54  ;;  %v2359_v12 = vmax.f32 %v2358_v62, %v2115_v49 }
 0x36b   :  { %v1924_v30 = vpop.f32.mrf.mxu1  ;;  %v2117_v3 = vpop.f32.mrf.mxu0 }
 0x36c   :  { %v2338_v13 = vmax.f32 %v2337_v5, %v1924_v30  ;;  %v2380_v37 = vmax.f32 %v2379_v59, %v2117_v3 }
 0x36d   :  { %v1926_v14 = vpop.f32.mrf.mxu1  ;;  %v2119_v20 = vpop.f32.mrf.mxu0 }
 0x36e   :  { %v2318_v53 = vmax.f32 %v2317_v32, %v1926_v14  ;;  %v2360_v17 = vmax.f32 %v2359_v12, %v2119_v20 }
 0x36f   :  { %v1928_v25 = vpop.f32.mrf.mxu1  ;;  %v2121_v23 = vpop.f32.mrf.mxu0 }
 0x370   :  { %v2339_v48 = vmax.f32 %v2338_v13, %v1928_v25  ;;  %v2381_v24 = vmax.f32 %v2380_v37, %v2121_v23 }
 0x371   :  { %v1932_v21 = vpop.f32.mrf.mxu1  ;;  %v2125_v43 = vpop.f32.mrf.mxu0 }
 0x372   :  { %v2319_v55 = vmax.f32 %v2318_v53, %v1932_v21  ;;  %v2361_v22 = vmax.f32 %v2360_v17, %v2125_v43 }
 0x373   :  { %v1934_v26 = vpop.f32.mrf.mxu1  ;;  %v2127_v45 = vpop.f32.mrf.mxu0 }
 0x374   :  { %v2340_v52 = vmax.f32 %v2339_v48, %v1934_v26  ;;  %v2382_v58 = vmax.f32 %v2381_v24, %v2127_v45 }
 0x375   :  { %v1936_v47 = vpop.f32.mrf.mxu1  ;;  %v2129_v2 = vpop.f32.mrf.mxu0 }
 0x376   :  { %v2320_v40 = vmax.f32 %v2319_v55, %v1936_v47  ;;  %v2362_v33 = vmax.f32 %v2361_v22, %v2129_v2 }
 0x377   :  { %v1938_v46 = vpop.f32.mrf.mxu1  ;;  %v2131_v41 = vpop.f32.mrf.mxu0 }
 0x378   :  { %v2341_v35 = vmax.f32 %v2340_v52, %v1938_v46  ;;  %v2383_v44 = vmax.f32 %v2382_v58, %v2131_v41 }
 0x379   :  { %v1942_v63 = vpop.f32.mrf.mxu1  ;;  %v2135_v38 = vpop.f32.mrf.mxu0 }
 0x37a   :  { %v2321_v29 = vmax.f32 %v2320_v40, %v1942_v63  ;;  %v2363_v50 = vmax.f32 %v2362_v33, %v2135_v38 }
 0x37b   :  { %v1944_v15 = vpop.f32.mrf.mxu1  ;;  %v2137_v16 = vpop.f32.mrf.mxu0 }
 0x37c   :  { %v2342_v31 = vmax.f32 %v2341_v35, %v1944_v15  ;;  %v2384_v56 = vmax.f32 %v2383_v44, %v2137_v16 }
 0x37d   :  { %v1946_v51 = vpop.f32.mrf.mxu1  ;;  %v2139_v19 = vpop.f32.mrf.mxu0 }
 0x37e   :  { %v2322_v57 = vmax.f32 %v2321_v29, %v1946_v51  ;;  %v2364_v7 = vmax.f32 %v2363_v50, %v2139_v19 }
 0x37f   :  { %v1948_v4 = vpop.f32.mrf.mxu1  ;;  %v2141_v18 = vpop.f32.mrf.mxu0 }
 0x380   :  { %v2323_v27 = vrot.slane %v2322_v57, 4  ;;  %v2365_v60 = vrot.slane %v2364_v7, 4  ;;  %v2343_v1 = vmax.f32 %v2342_v31, %v1948_v4  ;;  %v2385_v61 = vmax.f32 %v2384_v56, %v2141_v18 }
 0x381   :  { %v3795_v39 = vpop.f32.mrf.mxu1  ;;  %v3797_v42 = vpop.f32.mrf.mxu0 }
 0x382   :  { %v2324_v34 = vmax.f32 %v2322_v57, %v2323_v27  ;;  %v2366_v36 = vmax.f32 %v2364_v7, %v2365_v60  ;;  %v2344_v0 = vrot.slane %v2343_v1, 4  ;;  %v2386_v8 = vrot.slane %v2385_v61, 4 }
 0x383   :  { %v3799_v9 = vpop.f32.mrf.mxu1  ;;  %v3801_v10 = vpop.f32.mrf.mxu0 }
 0x384   :  { %v2325_v62 = vrot.slane %v2324_v34, 2  ;;  %v2367_v6 = vrot.slane %v2366_v36, 2  ;;  %v2345_v28 = vmax.f32 %v2343_v1, %v2344_v0  ;;  %v2387_v5 = vmax.f32 %v2385_v61, %v2386_v8 }
 0x385   :  { %v1956_v59 = vpop.f32.mrf.mxu1  ;;  %v2149_v54 = vpop.f32.mrf.mxu0 }
 0x386   :  { %v2326_v49 = vmax.f32 %v2324_v34, %v2325_v62  ;;  %v2368_v32 = vmax.f32 %v2366_v36, %v2367_v6  ;;  %v2346_v12 = vrot.slane %v2345_v28, 2  ;;  %v2388_v30 = vrot.slane %v2387_v5, 2 }
 0x387   :  { %v1958_v3 = vpop.f32.mrf.mxu1  ;;  %v2151_v13 = vpop.f32.mrf.mxu0  ;;  %v2476_v1 = vmax.f32 %v3795_v39, %v1956_v59  ;;  %v2518_v61 = vmax.f32 %v3797_v42, %v2149_v54 }
 0x388   :  { %v2327_v37 = vrot.slane %v2326_v49, 1  ;;  %v2369_v14 = vrot.slane %v2368_v32, 1  ;;  %v2347_v20 = vmax.f32 %v2345_v28, %v2346_v12  ;;  %v2389_v53 = vmax.f32 %v2387_v5, %v2388_v30 }
 0x389   :  { %v1962_v17 = vpop.f32.mrf.mxu1  ;;  %v2155_v25 = vpop.f32.mrf.mxu0  ;;  %v2497_v0 = vmax.f32 %v3799_v9, %v1958_v3  ;;  %v2539_v8 = vmax.f32 %v3801_v10, %v2151_v13 }
 0x38a   :  { %v2348_v23 = vrot.slane %v2347_v20, 1  ;;  %v2390_v48 = vrot.slane %v2389_v53, 1  ;;  %v2328_v43 = vmax.f32 %v2326_v49, %v2327_v37  ;;  %v2370_v55 = vmax.f32 %v2368_v32, %v2369_v14 }
 0x38b   :  { %v1964_v24 = vpop.f32.mrf.mxu1  ;;  %v2157_v21 = vpop.f32.mrf.mxu0  ;;  %v2477_v62 = vmax.f32 %v2476_v1, %v1962_v17  ;;  %v2519_v6 = vmax.f32 %v2518_v61, %v2155_v25 }
 0x38c   :  { %v2349_v22 = vmax.f32 %v2347_v20, %v2348_v23  ;;  %v2391_v26 = vmax.f32 %v2389_v53, %v2390_v48  ;;  %v2498_v49 = vmax.f32 %v2497_v0, %v1964_v24  ;;  %v2540_v32 = vmax.f32 %v2539_v8, %v2157_v21 }
 0x38d   :  { %v1966_v45 = vpop.f32.mrf.mxu1  ;;  %v2159_v52 = vpop.f32.mrf.mxu0 }
 0x38e   :  { %v2597_v58 = vcombine.low %v2328_v43, %v2349_v22  ;;  %v2598_v47 = vcombine.low %v2370_v55, %v2391_v26  ;;  %v2478_v12 = vmax.f32 %v2477_v62, %v1966_v45  ;;  %v2520_v30 = vmax.f32 %v2519_v6, %v2159_v52 }
 0x38f   :  { %v1968_v2 = vpop.f32.mrf.mxu1  ;;  %v2161_v40 = vpop.f32.mrf.mxu0 }
 0x390   :  { %v3804_v33 = vrot.slane %v2597_v58, %v3740_v11  ;;  %v3807_v46 = vrot.slane %v2598_v47, %v3740_v11  ;;  %v2499_v20 = vmax.f32 %v2498_v49, %v1968_v2  ;;  %v2541_v39 = vmax.f32 %v2540_v32, %v2161_v40 }
 0x391   :  { %v1972_v41 = vpop.f32.mrf.mxu1  ;;  %v2165_v35 = vpop.f32.mrf.mxu0 }
 0x392   :  { %v2613_v44 = vcombine.low %v3804_v33, %v3807_v46  ;;  %v2479_v59 = vmax.f32 %v2478_v12, %v1972_v41  ;;  %v2521_v42 = vmax.f32 %v2520_v30, %v2165_v35 }
 0x393   :  { %v1974_v63 = vpop.f32.mrf.mxu1  ;;  %v2167_v38 = vpop.f32.mrf.mxu0 }
 0x394   :  { %v2500_v23 = vmax.f32 %v2499_v20, %v1974_v63  ;;  %v2542_v9 = vmax.f32 %v2541_v39, %v2167_v38 }
 0x395   :  { %v1976_v29 = vpop.f32.mrf.mxu1  ;;  %v2169_v50 = vpop.f32.mrf.mxu0 }
 0x396   :  { %v2480_v3 = vmax.f32 %v2479_v59, %v1976_v29  ;;  %v2522_v10 = vmax.f32 %v2521_v42, %v2169_v50 }
 0x397   :  { %v1978_v15 = vpop.f32.mrf.mxu1  ;;  %v2171_v16 = vpop.f32.mrf.mxu0 }
 0x398   :  { %v2501_v25 = vmax.f32 %v2500_v23, %v1978_v15  ;;  %v2543_v48 = vmax.f32 %v2542_v9, %v2171_v16 }
 0x399   :  { %v1982_v31 = vpop.f32.mrf.mxu1  ;;  %v2175_v56 = vpop.f32.mrf.mxu0 }
 0x39a   :  { %v2481_v24 = vmax.f32 %v2480_v3, %v1982_v31  ;;  %v2523_v21 = vmax.f32 %v2522_v10, %v2175_v56 }
 0x39b   :  { %v1984_v51 = vpop.f32.mrf.mxu1  ;;  %v2177_v19 = vpop.f32.mrf.mxu0 }
 0x39c   :  { %v2502_v22 = vmax.f32 %v2501_v25, %v1984_v51  ;;  %v2544_v26 = vmax.f32 %v2543_v48, %v2177_v19 }
 0x39d   :  { %v1986_v57 = vpop.f32.mrf.mxu1  ;;  %v2179_v7 = vpop.f32.mrf.mxu0 }
 0x39e   :  { %v2482_v45 = vmax.f32 %v2481_v24, %v1986_v57  ;;  %v2524_v52 = vmax.f32 %v2523_v21, %v2179_v7 }
 0x39f   :  { %v1988_v4 = vpop.f32.mrf.mxu1  ;;  %v2181_v18 = vpop.f32.mrf.mxu0 }
 0x3a0   :  { %v2503_v2 = vmax.f32 %v2502_v22, %v1988_v4  ;;  %v2545_v40 = vmax.f32 %v2544_v26, %v2181_v18 }
 0x3a1   :  { %v1992_v27 = vpop.f32.mrf.mxu1  ;;  %v2185_v60 = vpop.f32.mrf.mxu0 }
 0x3a2   :  { %v2483_v41 = vmax.f32 %v2482_v45, %v1992_v27  ;;  %v2525_v35 = vmax.f32 %v2524_v52, %v2185_v60 }
 0x3a3   :  { %v1994_v34 = vpop.f32.mrf.mxu1  ;;  %v2187_v36 = vpop.f32.mrf.mxu0 }
 0x3a4   :  { %v2504_v29 = vmax.f32 %v2503_v2, %v1994_v34  ;;  %v2546_v50 = vmax.f32 %v2545_v40, %v2187_v36 }
 0x3a5   :  { %v1996_v28 = vpop.f32.mrf.mxu1  ;;  %v2189_v5 = vpop.f32.mrf.mxu0 }
 0x3a6   :  { %v2484_v15 = vmax.f32 %v2483_v41, %v1996_v28  ;;  %v2526_v16 = vmax.f32 %v2525_v35, %v2189_v5 }
 0x3a7   :  { %v1998_v37 = vpop.f32.mrf.mxu1  ;;  %v2191_v14 = vpop.f32.mrf.mxu0 }
 0x3a8   :  { %v2505_v1 = vmax.f32 %v2504_v29, %v1998_v37  ;;  %v2547_v61 = vmax.f32 %v2546_v50, %v2191_v14 }
 0x3a9   :  { %v2002_v54 = vpop.f32.mrf.mxu1  ;;  %v2195_v53 = vpop.f32.mrf.mxu0 }
 0x3aa   :  { %v2485_v51 = vmax.f32 %v2484_v15, %v2002_v54  ;;  %v2527_v19 = vmax.f32 %v2526_v16, %v2195_v53 }
 0x3ab   :  { %v2004_v13 = vpop.f32.mrf.mxu1  ;;  %v2197_v17 = vpop.f32.mrf.mxu0 }
 0x3ac   :  { %v2506_v0 = vmax.f32 %v2505_v1, %v2004_v13  ;;  %v2548_v8 = vmax.f32 %v2547_v61, %v2197_v17 }
 0x3ad   :  { %v2006_v43 = vpop.f32.mrf.mxu1  ;;  %v2199_v55 = vpop.f32.mrf.mxu0 }
 0x3ae   :  { %v2486_v4 = vmax.f32 %v2485_v51, %v2006_v43  ;;  %v2528_v18 = vmax.f32 %v2527_v19, %v2199_v55 }
 0x3af   :  { %v2008_v58 = vpop.f32.mrf.mxu1  ;;  %v2201_v47 = vpop.f32.mrf.mxu0 }
 0x3b0   :  { %v2507_v62 = vmax.f32 %v2506_v0, %v2008_v58  ;;  %v2549_v6 = vmax.f32 %v2548_v8, %v2201_v47 }
 0x3b1   :  { %v2012_v63 = vpop.f32.mrf.mxu1  ;;  %v2205_v38 = vpop.f32.mrf.mxu0 }
 0x3b2   :  { %v2487_v34 = vmax.f32 %v2486_v4, %v2012_v63  ;;  %v2529_v36 = vmax.f32 %v2528_v18, %v2205_v38 }
 0x3b3   :  { %v2014_v31 = vpop.f32.mrf.mxu1  ;;  %v2207_v56 = vpop.f32.mrf.mxu0 }
 0x3b4   :  { %v2508_v49 = vmax.f32 %v2507_v62, %v2014_v31  ;;  %v2550_v32 = vmax.f32 %v2549_v6, %v2207_v56 }
 0x3b5   :  { %v2016_v57 = vpop.f32.mrf.mxu1  ;;  %v2209_v7 = vpop.f32.mrf.mxu0 }
 0x3b6   :  { %v2488_v12 = vmax.f32 %v2487_v34, %v2016_v57  ;;  %v2530_v30 = vmax.f32 %v2529_v36, %v2209_v7 }
 0x3b7   :  { %v2018_v27 = vpop.f32.mrf.mxu1  ;;  %v2211_v60 = vpop.f32.mrf.mxu0 }
 0x3b8   :  { %v2509_v20 = vmax.f32 %v2508_v49, %v2018_v27  ;;  %v2551_v39 = vmax.f32 %v2550_v32, %v2211_v60 }
 0x3b9   :  { %v2022_v28 = vpop.f32.mrf.mxu1  ;;  %v2215_v5 = vpop.f32.mrf.mxu0 }
 0x3ba   :  { %v2489_v59 = vmax.f32 %v2488_v12, %v2022_v28  ;;  %v2531_v42 = vmax.f32 %v2530_v30, %v2215_v5 }
 0x3bb   :  { %v2024_v37 = vpop.f32.mrf.mxu1  ;;  %v2217_v14 = vpop.f32.mrf.mxu0 }
 0x3bc   :  { %v2510_v23 = vmax.f32 %v2509_v20, %v2024_v37  ;;  %v2552_v9 = vmax.f32 %v2551_v39, %v2217_v14 }
 0x3bd   :  { %v2026_v54 = vpop.f32.mrf.mxu1  ;;  %v2219_v53 = vpop.f32.mrf.mxu0 }
 0x3be   :  { %v2490_v3 = vmax.f32 %v2489_v59, %v2026_v54  ;;  %v2532_v10 = vmax.f32 %v2531_v42, %v2219_v53 }
 0x3bf   :  { %v2028_v13 = vpop.f32.mrf.mxu1  ;;  %v2221_v17 = vpop.f32.mrf.mxu0 }
 0x3c0   :  { %v2491_v25 = vrot.slane %v2490_v3, 4  ;;  %v2533_v48 = vrot.slane %v2532_v10, 4  ;;  %v2511_v24 = vmax.f32 %v2510_v23, %v2028_v13  ;;  %v2553_v21 = vmax.f32 %v2552_v9, %v2221_v17 }
 0x3c2   :  { %v2492_v43 = vmax.f32 %v2490_v3, %v2491_v25  ;;  %v2534_v55 = vmax.f32 %v2532_v10, %v2533_v48  ;;  %v2512_v22 = vrot.slane %v2511_v24, 4  ;;  %v2554_v26 = vrot.slane %v2553_v21, 4 }
 0x3c4   :  { %v2493_v45 = vrot.slane %v2492_v43, 2  ;;  %v2535_v52 = vrot.slane %v2534_v55, 2  ;;  %v2513_v58 = vmax.f32 %v2511_v24, %v2512_v22  ;;  %v2555_v47 = vmax.f32 %v2553_v21, %v2554_v26 }
 0x3c6   :  { %v2494_v2 = vmax.f32 %v2492_v43, %v2493_v45  ;;  %v2536_v40 = vmax.f32 %v2534_v55, %v2535_v52  ;;  %v2514_v41 = vrot.slane %v2513_v58, 2  ;;  %v2556_v35 = vrot.slane %v2555_v47, 2 }
 0x3c8   :  { %v2495_v63 = vrot.slane %v2494_v2, 1  ;;  %v2537_v38 = vrot.slane %v2536_v40, 1  ;;  %v2515_v29 = vmax.f32 %v2513_v58, %v2514_v41  ;;  %v2557_v50 = vmax.f32 %v2555_v47, %v2556_v35 }
 0x3ca   :  { %v2516_v15 = vrot.slane %v2515_v29, 1  ;;  %v2558_v16 = vrot.slane %v2557_v50, 1  ;;  %v2496_v31 = vmax.f32 %v2494_v2, %v2495_v63  ;;  %v2538_v56 = vmax.f32 %v2536_v40, %v2537_v38 }
 0x3cc   :  { %v2517_v1 = vmax.f32 %v2515_v29, %v2516_v15  ;;  %v2559_v61 = vmax.f32 %v2557_v50, %v2558_v16 }
 0x3ce   :  { %v2631_v51 = vcombine.low %v2496_v31, %v2517_v1  ;;  %v2632_v19 = vcombine.low %v2538_v56, %v2559_v61 }
 0x3d0   :  { %v2639_v57 = vrot.slane %v2631_v51, %v3740_v11  ;;  %v2646_v7 = vrot.slane %v2632_v19, %v3740_v11 }
 0x3d2   :  { %v2647_v0 = vcombine.low %v2639_v57, %v2646_v7 }
 0x3d4   :  { %v2663_v8 = vrot.slane %v2647_v0, 7 }
 0x3d6   :  { %v2664_v4 = vsel %vm2653_vm1, %v2663_v8, %v2613_v44 }
 0x3d7   :  { %v2665_v18 = vsel %vm2655_vm2, %v2663_v8, %v2664_v4 }
 0x3d8   :  { %v2666_v27 = vsel %vm2657_vm3, %v2663_v8, %v2665_v18 }
 0x3d9   :  { %v2667_v60 = vsel %vm2659_vm4, %v2663_v8, %v2666_v27 }
 0x3da   :  { %2671 = vst [vmem:[#allocation5 + $0x8] sm:$0xff] %v2667_v60 }
 0x3db   :  { %3057 = shalt.err (!%p3054_p9)
}
 0x3dc   :  { %2797 = dma.vmem_to_hbm [thread:$0]  %s2795_s7, 256, %s3833_s6, [#allocation4]  }
 0x3dd   :  { %3068 = dma.done.wait [#allocation4], 256  }
 0x3de   :  { %3069 = vsyncadd [#allocation4], 4294967040 }
 0x3df   :  { %2801 = vsyncpa [#allocation3], 1 }
 0x3e0   :  { %2802 = vsyncpa [#allocation4], 1 }

</bundles_post_ra>
